<compile_context>
chip_gen: v7x
topology: tpu7x:2x2x1
jax: 0.10.0
libtpu: 0.0.40
codegen_flags: <defaults>
</compile_context>

<pallas_src>
import functools

import jax
import jax.numpy as jnp
from jax.experimental import pallas as pl
from jax.experimental.pallas import tpu as pltpu


def _row_col_ids(n_pix, width):
    """(1, n_pix) int32 row / column index of each flattened pixel p = h*width + w."""
    lane = jax.lax.broadcasted_iota(jnp.int32, (1, n_pix), 1)
    if (width & (width - 1)) == 0:                 # power of two -> shift/mask (VPU bit ops)
        lb = width.bit_length() - 1
        return lane >> lb, lane & (width - 1)
    return lane // width, lane % width


# -----------------------------------------------------------------------------
# Kernel 1: 5x5 / stride-2 / pad-2 conv (+ bias), on stride-2 phase images.
# -----------------------------------------------------------------------------
def _downsample5x5_kernel(xph_ref, w_ref, b_ref, o_ref, *, Cin, Cout, Ho, Wo):
    # xph_ref : (1, 4, Cin, Ho*Wo)   stride-2 phase images, phase index = ph*2 + pw
    # w_ref   : (Cout, 25*Cin)       im2col weights, tap-major (ci fastest)
    # b_ref   : (Cout, 1)
    # o_ref   : (1, Cout, Ho*Wo)     lane-dense output
    HW = Ho * Wo
    hh, ww = _row_col_ids(HW, Wo)
    phases = [xph_ref[0, i].astype(jnp.float32) for i in range(4)]   # 4 x (Cin, HW)

    cols = []
    for kh in range(5):
        ph = kh % 2
        dh = (kh - 2 - ph) // 2                    # row shift inside the phase image
        for kw in range(5):
            pw = kw % 2
            dw = (kw - 2 - pw) // 2                # col shift inside the phase image
            src = phases[ph * 2 + pw]
            s = dh * Wo + dw
            if s != 0:
                # shifted[c, p] = src[c, (p + s) mod HW]; out-of-range lanes masked below
                src = pltpu.roll(src, shift=(-s) % HW, axis=1)
            valid = ((hh + dh >= 0) & (hh + dh < Ho) &
                     (ww + dw >= 0) & (ww + dw < Wo)).astype(jnp.float32)
            cols.append(src * valid)
    patches = jnp.concatenate(cols, axis=0)        # (25*Cin, HW), sublane-aligned pieces
    y = jnp.dot(w_ref[...], patches, preferred_element_type=jnp.float32)   # (Cout, HW)
    o_ref[0] = (y + b_ref[...]).astype(o_ref.dtype)


def downsample_conv5x5_s2(x, w, b):
    """5x5 / stride-2 / pad-2 conv + bias. x: (N, Cin, H, W) NCHW -> (N, Cout, H/2, W/2)."""
    N, Cin, H, W = x.shape
    Cout = w.shape[0]
    assert H % 2 == 0 and W % 2 == 0, "stride-2 phase split needs even H, W"
    Ho, Wo = H // 2, W // 2

    # Pad the contraction (input-channel) dim to a sublane multiple; XLA fuses this
    # pad into the phase-split copy below (no extra HBM pass).
    Cp = -(-Cin // 8) * 8
    xp = x.astype(jnp.float32)
    wp = w.astype(jnp.float32)
    if Cp != Cin:
        xp = jnp.pad(xp, ((0, 0), (0, Cp - Cin), (0, 0), (0, 0)))
        wp = jnp.pad(wp, ((0, 0), (0, Cp - Cin), (0, 0), (0, 0)))

    # Stride-2 phase decomposition (layout plumbing only): every 5x5 tap becomes a
    # {-1,0,+1} lane roll of one of these 4 images inside the kernel.
    phases = jnp.stack(
        [xp[:, :, ph::2, pw::2].reshape(N, Cp, Ho * Wo)
         for ph in range(2) for pw in range(2)], axis=1)              # (N, 4, Cp, Ho*Wo)
    # (Cout, Cp, 5, 5) -> (Cout, 25*Cp), tap-major, ci fastest
    w_flat = jnp.transpose(wp, (0, 2, 3, 1)).reshape(Cout, 25 * Cp)
    b2 = b.reshape(Cout, 1).astype(jnp.float32)

    kernel = functools.partial(_downsample5x5_kernel, Cin=Cp, Cout=Cout, Ho=Ho, Wo=Wo)
    out = pl.pallas_call(
        kernel,
        out_shape=jax.ShapeDtypeStruct((N, Cout, Ho * Wo), jnp.float32),
        grid_spec=pltpu.PrefetchScalarGridSpec(
            num_scalar_prefetch=0,
            grid=(N,),
            in_specs=[
                pl.BlockSpec((1, 4, Cp, Ho * Wo), lambda n: (n, 0, 0, 0)),
                pl.BlockSpec((Cout, 25 * Cp), lambda n: (0, 0)),      # resident weights
                pl.BlockSpec((Cout, 1), lambda n: (0, 0)),
            ],
            out_specs=pl.BlockSpec((1, Cout, Ho * Wo), lambda n: (n, 0, 0)),
        ),
        compiler_params=pltpu.CompilerParams(dimension_semantics=("parallel",)),
    )(phases, w_flat, b2)
    return out.reshape(N, Cout, Ho, Wo)


# -----------------------------------------------------------------------------
# Kernel 2: fused [6 x (Conv3x3 + BN(eval) + LeakyReLU(0.2) + residual)] + conv_alone
# -----------------------------------------------------------------------------
def _res_stack_kernel(x_ref, w_ref, scale_ref, shift_ref, o_ref, *, C, H, W, num_blocks):
    # x_ref     : (1, C, H*W)            lane-dense CHW-flat activation
    # w_ref     : (num_blocks+1, C, 9*C) per-conv im2col weights (last = conv_alone)
    # scale_ref : (num_blocks+1, C, 1)   folded BN scale (1.0 for conv_alone)
    # shift_ref : (num_blocks+1, C, 1)   folded BN shift (+ conv bias)
    # o_ref     : (1, C, H*W)
    HW = H * W
    hh, ww = _row_col_ids(HW, W)
    taps = [(dh, dw) for dh in (-1, 0, 1) for dw in (-1, 0, 1)]
    # Boundary masks depend only on the tap -> computed once, reused by all 7 convs.
    masks = [((hh + dh >= 0) & (hh + dh < H) &
              (ww + dw >= 0) & (ww + dw < W)).astype(jnp.float32)
             for dh, dw in taps]

    def conv3x3(act, w_flat):
        # Build the (9*C, HW) im2col patch matrix with lane rolls (XLU) + masks,
        # then one MXU matmul: (C, 9C) x (9C, HW) -> (C, HW).
        cols = []
        for t, (dh, dw) in enumerate(taps):
            s = dh * W + dw
            shifted = act if s == 0 else pltpu.roll(act, shift=(-s) % HW, axis=1)
            cols.append(shifted * masks[t])
        patches = jnp.concatenate(cols, axis=0)
        return jnp.dot(w_flat, patches, preferred_element_type=jnp.float32)

    act = x_ref[0].astype(jnp.float32)                                # (C, HW)
    for i in range(num_blocks):                                       # 6 BasicBlocks
        y = conv3x3(act, w_ref[i])
        y = y * scale_ref[i] + shift_ref[i]                           # eval-mode BN (folded)
        y = jnp.where(y > 0, y, 0.2 * y)                              # LeakyReLU(0.2)
        act = act + y                                                 # residual (downsample=None)
    # conv_alone: plain conv + bias (scale=1, shift=bias), no activation / residual.
    y = conv3x3(act, w_ref[num_blocks])
    o_ref[0] = (y * scale_ref[num_blocks] + shift_ref[num_blocks]).astype(o_ref.dtype)


def residual_stack_and_conv_alone(x, blocks, alone_w, alone_b, eps=1e-5):
    """x: (N, C, H, W). blocks: list of (w, b, gamma, beta, running_mean, running_var)."""
    N, C, H, W = x.shape
    HW = H * W

    w_list, scale_list, shift_list = [], [], []
    for (w, b, gamma, beta, mean, var) in blocks:
        w_list.append(jnp.transpose(w, (0, 2, 3, 1)).reshape(C, 9 * C))
        s = gamma / jnp.sqrt(var + eps)
        scale_list.append(s)
        shift_list.append(beta + (b - mean) * s)                      # conv bias folded in
    w_list.append(jnp.transpose(alone_w, (0, 2, 3, 1)).reshape(C, 9 * C))
    scale_list.append(jnp.ones((C,), jnp.float32))
    shift_list.append(alone_b)

    n_conv = len(w_list)                                              # 7
    w_stack = jnp.stack(w_list).astype(jnp.float32)                   # (7, C, 9C)
    scale_stack = jnp.stack(scale_list).reshape(n_conv, C, 1).astype(jnp.float32)
    shift_stack = jnp.stack(shift_list).reshape(n_conv, C, 1).astype(jnp.float32)

    kernel = functools.partial(_res_stack_kernel, C=C, H=H, W=W, num_blocks=len(blocks))
    out = pl.pallas_call(
        kernel,
        out_shape=jax.ShapeDtypeStruct((N, C, HW), jnp.float32),
        grid_spec=pltpu.PrefetchScalarGridSpec(
            num_scalar_prefetch=0,
            grid=(N,),
            in_specs=[
                pl.BlockSpec((1, C, HW), lambda n: (n, 0, 0)),
                pl.BlockSpec((n_conv, C, 9 * C), lambda n: (0, 0, 0)),   # resident weights
                pl.BlockSpec((n_conv, C, 1), lambda n: (0, 0, 0)),
                pl.BlockSpec((n_conv, C, 1), lambda n: (0, 0, 0)),
            ],
            out_specs=pl.BlockSpec((1, C, HW), lambda n: (n, 0, 0)),
        ),
        compiler_params=pltpu.CompilerParams(dimension_semantics=("parallel",)),
    )(x.reshape(N, C, HW).astype(jnp.float32), w_stack, scale_stack, shift_stack)
    return out.reshape(N, C, H, W)


def feature_extraction_forward(rgb, params, eps=1e-5):
    """FeatureExtraction forward. rgb: (N, 3, H, W) NCHW."""
    x = rgb.astype(jnp.float32)
    for wd, bd in zip(params["down_w"], params["down_b"]):
        x = downsample_conv5x5_s2(x, wd, bd)
    return residual_stack_and_conv_alone(x, params["blocks"],
                                         params["alone_w"], params["alone_b"], eps)


# -----------------------------------------------------------------------------
# Pure-JAX reference (mirrors PyTorch eval-mode FeatureExtraction)
# -----------------------------------------------------------------------------
def _reference_forward(rgb, params, eps=1e-5):
    dn = ("NCHW", "OIHW", "NCHW")
    x = rgb
    for wd, bd in zip(params["down_w"], params["down_b"]):
        x = jax.lax.conv_general_dilated(x, wd, (2, 2), ((2, 2), (2, 2)),
                                         dimension_numbers=dn)
        x = x + bd[None, :, None, None]
    for (w, b, g, be, m, v) in params["blocks"]:
        y = jax.lax.conv_general_dilated(x, w, (1, 1), ((1, 1), (1, 1)),
                                         dimension_numbers=dn)
        y = y + b[None, :, None, None]
        y = (y - m[None, :, None, None]) / jnp.sqrt(v[None, :, None, None] + eps)
        y = y * g[None, :, None, None] + be[None, :, None, None]
        y = jnp.where(y > 0, y, 0.2 * y)
        x = x + y
    y = jax.lax.conv_general_dilated(x, params["alone_w"], (1, 1), ((1, 1), (1, 1)),
                                     dimension_numbers=dn)
    return y + params["alone_b"][None, :, None, None]


if __name__ == "__main__":
    # FeatureExtraction(k=1): rgb (2, 3, 32, 32) -> downsample (2, 32, 16, 16)
    # -> 6 residual BasicBlocks -> conv_alone -> (2, 32, 16, 16).
    N, H, W = 2, 32, 32
    K_DOWN, C = 1, 32

    key = jax.random.PRNGKey(0)
    keys = iter(jax.random.split(key, 64))

    def nrm(k, shape, s=1.0):
        return s * jax.random.normal(k, shape, dtype=jnp.float32)

    rgb = nrm(next(keys), (N, 3, H, W))

    params = {"down_w": [], "down_b": [], "blocks": [], "alone_w": None, "alone_b": None}
    cin = 3
    for _ in range(K_DOWN):
        params["down_w"].append(nrm(next(keys), (C, cin, 5, 5), 0.05))
        params["down_b"].append(nrm(next(keys), (C,), 0.1))
        cin = C
    for _ in range(6):
        w = nrm(next(keys), (C, C, 3, 3), 0.05)
        b = nrm(next(keys), (C,), 0.1)
        gamma = 1.0 + nrm(next(keys), (C,), 0.1)
        beta = nrm(next(keys), (C,), 0.1)
        mean = nrm(next(keys), (C,), 0.1)
        var = 1.0 + 0.1 * jax.random.uniform(next(keys), (C,), dtype=jnp.float32)
        params["blocks"].append((w, b, gamma, beta, mean, var))
    params["alone_w"] = nrm(next(keys), (C, C, 3, 3), 0.05)
    params["alone_b"] = nrm(next(keys), (C,), 0.1)

    out = feature_extraction_forward(rgb, params)
    out = jax.block_until_ready(out)

    ref = _reference_forward(rgb, params)
    assert out.shape == (N, C, H // 2, W // 2), out.shape
    rel_err = jnp.max(jnp.abs(out - ref)) / (jnp.max(jnp.abs(ref)) + 1e-6)
    assert rel_err < 1e-3, f"mismatch vs reference: rel_err={rel_err}"

    print("KERNEL_OK")
</pallas_src>

<mosaic_0001>
module attributes {stable_mosaic.version = 11 : i64} {
  func.func @_downsample5x5_kernel(%arg0: i32, %arg1: memref<1x4x8x256xf32, #tpu.memory_space<vmem>>, %arg2: memref<32x200xf32, #tpu.memory_space<vmem>>, %arg3: memref<32x1xf32, #tpu.memory_space<vmem>>, %arg4: memref<1x32x256xf32, #tpu.memory_space<vmem>>) attributes {dimension_semantics = [#tpu.dimension_semantics<parallel>], iteration_bounds = array<i64: 2>, scalar_prefetch = 0 : i64, scratch_operands = 0 : i64, tpu.core_type = #tpu.core_type<tc>, window_params = [{transform_indices = @transform_0, window_bounds = array<i64: 1, 4, 8, 256>}, {pipeline_mode = #tpu.pipeline_mode<synchronous>, transform_indices = @transform_1, window_bounds = array<i64: 32, 200>}, {pipeline_mode = #tpu.pipeline_mode<synchronous>, transform_indices = @transform_2, window_bounds = array<i64: 32, 1>}, {transform_indices = @transform_3, window_bounds = array<i64: 1, 32, 256>}]} {
    %0 = tpu.iota {dimensions = array<i32: 1>} : vector<1x256xi32>
    %c4_i32 = arith.constant 4 : i32
    %1 = vector.broadcast %c4_i32 : i32 to vector<1x256xi32>
    %2 = arith.shrsi %0, %1 : vector<1x256xi32>
    %c15_i32 = arith.constant 15 : i32
    %3 = vector.broadcast %c15_i32 : i32 to vector<1x256xi32>
    %4 = arith.andi %0, %3 : vector<1x256xi32>
    %c0 = arith.constant 0 : index
    %c0_0 = arith.constant 0 : index
    %c0_1 = arith.constant 0 : index
    %c0_2 = arith.constant 0 : index
    %5 = vector.load %arg1[%c0, %c0_0, %c0_1, %c0_2] : memref<1x4x8x256xf32, #tpu.memory_space<vmem>>, vector<1x1x8x256xf32>
    %6 = vector.shape_cast %5 : vector<1x1x8x256xf32> to vector<8x256xf32>
    %c0_3 = arith.constant 0 : index
    %c1 = arith.constant 1 : index
    %c0_4 = arith.constant 0 : index
    %c0_5 = arith.constant 0 : index
    %7 = vector.load %arg1[%c0_3, %c1, %c0_4, %c0_5] : memref<1x4x8x256xf32, #tpu.memory_space<vmem>>, vector<1x1x8x256xf32>
    %8 = vector.shape_cast %7 : vector<1x1x8x256xf32> to vector<8x256xf32>
    %c0_6 = arith.constant 0 : index
    %c2 = arith.constant 2 : index
    %c0_7 = arith.constant 0 : index
    %c0_8 = arith.constant 0 : index
    %9 = vector.load %arg1[%c0_6, %c2, %c0_7, %c0_8] : memref<1x4x8x256xf32, #tpu.memory_space<vmem>>, vector<1x1x8x256xf32>
    %10 = vector.shape_cast %9 : vector<1x1x8x256xf32> to vector<8x256xf32>
    %c0_9 = arith.constant 0 : index
    %c3 = arith.constant 3 : index
    %c0_10 = arith.constant 0 : index
    %c0_11 = arith.constant 0 : index
    %11 = vector.load %arg1[%c0_9, %c3, %c0_10, %c0_11] : memref<1x4x8x256xf32, #tpu.memory_space<vmem>>, vector<1x1x8x256xf32>
    %12 = vector.shape_cast %11 : vector<1x1x8x256xf32> to vector<8x256xf32>
    %c17_i32 = arith.constant 17 : i32
    %13 = tpu.dynamic_rotate %6 by %c17_i32 dim 1 : vector<8x256xf32>, i32 -> vector<8x256xf32>
    %c-1_i32 = arith.constant -1 : i32
    %14 = vector.broadcast %c-1_i32 : i32 to vector<1x256xi32>
    %15 = arith.addi %2, %14 : vector<1x256xi32>
    %c0_i32 = arith.constant 0 : i32
    %16 = vector.broadcast %c0_i32 : i32 to vector<1x256xi32>
    %17 = arith.cmpi sge, %15, %16 : vector<1x256xi32>
    %c-1_i32_12 = arith.constant -1 : i32
    %18 = vector.broadcast %c-1_i32_12 : i32 to vector<1x256xi32>
    %19 = arith.addi %2, %18 : vector<1x256xi32>
    %c16_i32 = arith.constant 16 : i32
    %20 = vector.broadcast %c16_i32 : i32 to vector<1x256xi32>
    %21 = arith.cmpi slt, %19, %20 : vector<1x256xi32>
    %22 = arith.andi %17, %21 : vector<1x256xi1>
    %c-1_i32_13 = arith.constant -1 : i32
    %23 = vector.broadcast %c-1_i32_13 : i32 to vector<1x256xi32>
    %24 = arith.addi %4, %23 : vector<1x256xi32>
    %c0_i32_14 = arith.constant 0 : i32
    %25 = vector.broadcast %c0_i32_14 : i32 to vector<1x256xi32>
    %26 = arith.cmpi sge, %24, %25 : vector<1x256xi32>
    %27 = arith.andi %22, %26 : vector<1x256xi1>
    %c-1_i32_15 = arith.constant -1 : i32
    %28 = vector.broadcast %c-1_i32_15 : i32 to vector<1x256xi32>
    %29 = arith.addi %4, %28 : vector<1x256xi32>
    %c16_i32_16 = arith.constant 16 : i32
    %30 = vector.broadcast %c16_i32_16 : i32 to vector<1x256xi32>
    %31 = arith.cmpi slt, %29, %30 : vector<1x256xi32>
    %32 = arith.andi %27, %31 : vector<1x256xi1>
    %33 = arith.extui %32 : vector<1x256xi1> to vector<1x256xi32>
    %34 = arith.sitofp %33 : vector<1x256xi32> to vector<1x256xf32>
    %35 = vector.broadcast %34 : vector<1x256xf32> to vector<8x256xf32>
    %36 = arith.mulf %13, %35 : vector<8x256xf32>
    %c17_i32_17 = arith.constant 17 : i32
    %37 = tpu.dynamic_rotate %8 by %c17_i32_17 dim 1 : vector<8x256xf32>, i32 -> vector<8x256xf32>
    %c-1_i32_18 = arith.constant -1 : i32
    %38 = vector.broadcast %c-1_i32_18 : i32 to vector<1x256xi32>
    %39 = arith.addi %2, %38 : vector<1x256xi32>
    %c0_i32_19 = arith.constant 0 : i32
    %40 = vector.broadcast %c0_i32_19 : i32 to vector<1x256xi32>
    %41 = arith.cmpi sge, %39, %40 : vector<1x256xi32>
    %c-1_i32_20 = arith.constant -1 : i32
    %42 = vector.broadcast %c-1_i32_20 : i32 to vector<1x256xi32>
    %43 = arith.addi %2, %42 : vector<1x256xi32>
    %c16_i32_21 = arith.constant 16 : i32
    %44 = vector.broadcast %c16_i32_21 : i32 to vector<1x256xi32>
    %45 = arith.cmpi slt, %43, %44 : vector<1x256xi32>
    %46 = arith.andi %41, %45 : vector<1x256xi1>
    %c-1_i32_22 = arith.constant -1 : i32
    %47 = vector.broadcast %c-1_i32_22 : i32 to vector<1x256xi32>
    %48 = arith.addi %4, %47 : vector<1x256xi32>
    %c0_i32_23 = arith.constant 0 : i32
    %49 = vector.broadcast %c0_i32_23 : i32 to vector<1x256xi32>
    %50 = arith.cmpi sge, %48, %49 : vector<1x256xi32>
    %51 = arith.andi %46, %50 : vector<1x256xi1>
    %c-1_i32_24 = arith.constant -1 : i32
    %52 = vector.broadcast %c-1_i32_24 : i32 to vector<1x256xi32>
    %53 = arith.addi %4, %52 : vector<1x256xi32>
    %c16_i32_25 = arith.constant 16 : i32
    %54 = vector.broadcast %c16_i32_25 : i32 to vector<1x256xi32>
    %55 = arith.cmpi slt, %53, %54 : vector<1x256xi32>
    %56 = arith.andi %51, %55 : vector<1x256xi1>
    %57 = arith.extui %56 : vector<1x256xi1> to vector<1x256xi32>
    %58 = arith.sitofp %57 : vector<1x256xi32> to vector<1x256xf32>
    %59 = vector.broadcast %58 : vector<1x256xf32> to vector<8x256xf32>
    %60 = arith.mulf %37, %59 : vector<8x256xf32>
    %c16_i32_26 = arith.constant 16 : i32
    %61 = tpu.dynamic_rotate %6 by %c16_i32_26 dim 1 : vector<8x256xf32>, i32 -> vector<8x256xf32>
    %c-1_i32_27 = arith.constant -1 : i32
    %62 = vector.broadcast %c-1_i32_27 : i32 to vector<1x256xi32>
    %63 = arith.addi %2, %62 : vector<1x256xi32>
    %c0_i32_28 = arith.constant 0 : i32
    %64 = vector.broadcast %c0_i32_28 : i32 to vector<1x256xi32>
    %65 = arith.cmpi sge, %63, %64 : vector<1x256xi32>
    %c-1_i32_29 = arith.constant -1 : i32
    %66 = vector.broadcast %c-1_i32_29 : i32 to vector<1x256xi32>
    %67 = arith.addi %2, %66 : vector<1x256xi32>
    %c16_i32_30 = arith.constant 16 : i32
    %68 = vector.broadcast %c16_i32_30 : i32 to vector<1x256xi32>
    %69 = arith.cmpi slt, %67, %68 : vector<1x256xi32>
    %70 = arith.andi %65, %69 : vector<1x256xi1>
    %c0_i32_31 = arith.constant 0 : i32
    %71 = vector.broadcast %c0_i32_31 : i32 to vector<1x256xi32>
    %72 = arith.addi %4, %71 : vector<1x256xi32>
    %c0_i32_32 = arith.constant 0 : i32
    %73 = vector.broadcast %c0_i32_32 : i32 to vector<1x256xi32>
    %74 = arith.cmpi sge, %72, %73 : vector<1x256xi32>
    %75 = arith.andi %70, %74 : vector<1x256xi1>
    %c0_i32_33 = arith.constant 0 : i32
    %76 = vector.broadcast %c0_i32_33 : i32 to vector<1x256xi32>
    %77 = arith.addi %4, %76 : vector<1x256xi32>
    %c16_i32_34 = arith.constant 16 : i32
    %78 = vector.broadcast %c16_i32_34 : i32 to vector<1x256xi32>
    %79 = arith.cmpi slt, %77, %78 : vector<1x256xi32>
    %80 = arith.andi %75, %79 : vector<1x256xi1>
    %81 = arith.extui %80 : vector<1x256xi1> to vector<1x256xi32>
    %82 = arith.sitofp %81 : vector<1x256xi32> to vector<1x256xf32>
    %83 = vector.broadcast %82 : vector<1x256xf32> to vector<8x256xf32>
    %84 = arith.mulf %61, %83 : vector<8x256xf32>
    %c16_i32_35 = arith.constant 16 : i32
    %85 = tpu.dynamic_rotate %8 by %c16_i32_35 dim 1 : vector<8x256xf32>, i32 -> vector<8x256xf32>
    %c-1_i32_36 = arith.constant -1 : i32
    %86 = vector.broadcast %c-1_i32_36 : i32 to vector<1x256xi32>
    %87 = arith.addi %2, %86 : vector<1x256xi32>
    %c0_i32_37 = arith.constant 0 : i32
    %88 = vector.broadcast %c0_i32_37 : i32 to vector<1x256xi32>
    %89 = arith.cmpi sge, %87, %88 : vector<1x256xi32>
    %c-1_i32_38 = arith.constant -1 : i32
    %90 = vector.broadcast %c-1_i32_38 : i32 to vector<1x256xi32>
    %91 = arith.addi %2, %90 : vector<1x256xi32>
    %c16_i32_39 = arith.constant 16 : i32
    %92 = vector.broadcast %c16_i32_39 : i32 to vector<1x256xi32>
    %93 = arith.cmpi slt, %91, %92 : vector<1x256xi32>
    %94 = arith.andi %89, %93 : vector<1x256xi1>
    %c0_i32_40 = arith.constant 0 : i32
    %95 = vector.broadcast %c0_i32_40 : i32 to vector<1x256xi32>
    %96 = arith.addi %4, %95 : vector<1x256xi32>
    %c0_i32_41 = arith.constant 0 : i32
    %97 = vector.broadcast %c0_i32_41 : i32 to vector<1x256xi32>
    %98 = arith.cmpi sge, %96, %97 : vector<1x256xi32>
    %99 = arith.andi %94, %98 : vector<1x256xi1>
    %c0_i32_42 = arith.constant 0 : i32
    %100 = vector.broadcast %c0_i32_42 : i32 to vector<1x256xi32>
    %101 = arith.addi %4, %100 : vector<1x256xi32>
    %c16_i32_43 = arith.constant 16 : i32
    %102 = vector.broadcast %c16_i32_43 : i32 to vector<1x256xi32>
    %103 = arith.cmpi slt, %101, %102 : vector<1x256xi32>
    %104 = arith.andi %99, %103 : vector<1x256xi1>
    %105 = arith.extui %104 : vector<1x256xi1> to vector<1x256xi32>
    %106 = arith.sitofp %105 : vector<1x256xi32> to vector<1x256xf32>
    %107 = vector.broadcast %106 : vector<1x256xf32> to vector<8x256xf32>
    %108 = arith.mulf %85, %107 : vector<8x256xf32>
    %c15_i32_44 = arith.constant 15 : i32
    %109 = tpu.dynamic_rotate %6 by %c15_i32_44 dim 1 : vector<8x256xf32>, i32 -> vector<8x256xf32>
    %c-1_i32_45 = arith.constant -1 : i32
    %110 = vector.broadcast %c-1_i32_45 : i32 to vector<1x256xi32>
    %111 = arith.addi %2, %110 : vector<1x256xi32>
    %c0_i32_46 = arith.constant 0 : i32
    %112 = vector.broadcast %c0_i32_46 : i32 to vector<1x256xi32>
    %113 = arith.cmpi sge, %111, %112 : vector<1x256xi32>
    %c-1_i32_47 = arith.constant -1 : i32
    %114 = vector.broadcast %c-1_i32_47 : i32 to vector<1x256xi32>
    %115 = arith.addi %2, %114 : vector<1x256xi32>
    %c16_i32_48 = arith.constant 16 : i32
    %116 = vector.broadcast %c16_i32_48 : i32 to vector<1x256xi32>
    %117 = arith.cmpi slt, %115, %116 : vector<1x256xi32>
    %118 = arith.andi %113, %117 : vector<1x256xi1>
    %c1_i32 = arith.constant 1 : i32
    %119 = vector.broadcast %c1_i32 : i32 to vector<1x256xi32>
    %120 = arith.addi %4, %119 : vector<1x256xi32>
    %c0_i32_49 = arith.constant 0 : i32
    %121 = vector.broadcast %c0_i32_49 : i32 to vector<1x256xi32>
    %122 = arith.cmpi sge, %120, %121 : vector<1x256xi32>
    %123 = arith.andi %118, %122 : vector<1x256xi1>
    %c1_i32_50 = arith.constant 1 : i32
    %124 = vector.broadcast %c1_i32_50 : i32 to vector<1x256xi32>
    %125 = arith.addi %4, %124 : vector<1x256xi32>
    %c16_i32_51 = arith.constant 16 : i32
    %126 = vector.broadcast %c16_i32_51 : i32 to vector<1x256xi32>
    %127 = arith.cmpi slt, %125, %126 : vector<1x256xi32>
    %128 = arith.andi %123, %127 : vector<1x256xi1>
    %129 = arith.extui %128 : vector<1x256xi1> to vector<1x256xi32>
    %130 = arith.sitofp %129 : vector<1x256xi32> to vector<1x256xf32>
    %131 = vector.broadcast %130 : vector<1x256xf32> to vector<8x256xf32>
    %132 = arith.mulf %109, %131 : vector<8x256xf32>
    %c17_i32_52 = arith.constant 17 : i32
    %133 = tpu.dynamic_rotate %10 by %c17_i32_52 dim 1 : vector<8x256xf32>, i32 -> vector<8x256xf32>
    %c-1_i32_53 = arith.constant -1 : i32
    %134 = vector.broadcast %c-1_i32_53 : i32 to vector<1x256xi32>
    %135 = arith.addi %2, %134 : vector<1x256xi32>
    %c0_i32_54 = arith.constant 0 : i32
    %136 = vector.broadcast %c0_i32_54 : i32 to vector<1x256xi32>
    %137 = arith.cmpi sge, %135, %136 : vector<1x256xi32>
    %c-1_i32_55 = arith.constant -1 : i32
    %138 = vector.broadcast %c-1_i32_55 : i32 to vector<1x256xi32>
    %139 = arith.addi %2, %138 : vector<1x256xi32>
    %c16_i32_56 = arith.constant 16 : i32
    %140 = vector.broadcast %c16_i32_56 : i32 to vector<1x256xi32>
    %141 = arith.cmpi slt, %139, %140 : vector<1x256xi32>
    %142 = arith.andi %137, %141 : vector<1x256xi1>
    %c-1_i32_57 = arith.constant -1 : i32
    %143 = vector.broadcast %c-1_i32_57 : i32 to vector<1x256xi32>
    %144 = arith.addi %4, %143 : vector<1x256xi32>
    %c0_i32_58 = arith.constant 0 : i32
    %145 = vector.broadcast %c0_i32_58 : i32 to vector<1x256xi32>
    %146 = arith.cmpi sge, %144, %145 : vector<1x256xi32>
    %147 = arith.andi %142, %146 : vector<1x256xi1>
    %c-1_i32_59 = arith.constant -1 : i32
    %148 = vector.broadcast %c-1_i32_59 : i32 to vector<1x256xi32>
    %149 = arith.addi %4, %148 : vector<1x256xi32>
    %c16_i32_60 = arith.constant 16 : i32
    %150 = vector.broadcast %c16_i32_60 : i32 to vector<1x256xi32>
    %151 = arith.cmpi slt, %149, %150 : vector<1x256xi32>
    %152 = arith.andi %147, %151 : vector<1x256xi1>
    %153 = arith.extui %152 : vector<1x256xi1> to vector<1x256xi32>
    %154 = arith.sitofp %153 : vector<1x256xi32> to vector<1x256xf32>
    %155 = vector.broadcast %154 : vector<1x256xf32> to vector<8x256xf32>
    %156 = arith.mulf %133, %155 : vector<8x256xf32>
    %c17_i32_61 = arith.constant 17 : i32
    %157 = tpu.dynamic_rotate %12 by %c17_i32_61 dim 1 : vector<8x256xf32>, i32 -> vector<8x256xf32>
    %c-1_i32_62 = arith.constant -1 : i32
    %158 = vector.broadcast %c-1_i32_62 : i32 to vector<1x256xi32>
    %159 = arith.addi %2, %158 : vector<1x256xi32>
    %c0_i32_63 = arith.constant 0 : i32
    %160 = vector.broadcast %c0_i32_63 : i32 to vector<1x256xi32>
    %161 = arith.cmpi sge, %159, %160 : vector<1x256xi32>
    %c-1_i32_64 = arith.constant -1 : i32
    %162 = vector.broadcast %c-1_i32_64 : i32 to vector<1x256xi32>
    %163 = arith.addi %2, %162 : vector<1x256xi32>
    %c16_i32_65 = arith.constant 16 : i32
    %164 = vector.broadcast %c16_i32_65 : i32 to vector<1x256xi32>
    %165 = arith.cmpi slt, %163, %164 : vector<1x256xi32>
    %166 = arith.andi %161, %165 : vector<1x256xi1>
    %c-1_i32_66 = arith.constant -1 : i32
    %167 = vector.broadcast %c-1_i32_66 : i32 to vector<1x256xi32>
    %168 = arith.addi %4, %167 : vector<1x256xi32>
    %c0_i32_67 = arith.constant 0 : i32
    %169 = vector.broadcast %c0_i32_67 : i32 to vector<1x256xi32>
    %170 = arith.cmpi sge, %168, %169 : vector<1x256xi32>
    %171 = arith.andi %166, %170 : vector<1x256xi1>
    %c-1_i32_68 = arith.constant -1 : i32
    %172 = vector.broadcast %c-1_i32_68 : i32 to vector<1x256xi32>
    %173 = arith.addi %4, %172 : vector<1x256xi32>
    %c16_i32_69 = arith.constant 16 : i32
    %174 = vector.broadcast %c16_i32_69 : i32 to vector<1x256xi32>
    %175 = arith.cmpi slt, %173, %174 : vector<1x256xi32>
    %176 = arith.andi %171, %175 : vector<1x256xi1>
    %177 = arith.extui %176 : vector<1x256xi1> to vector<1x256xi32>
    %178 = arith.sitofp %177 : vector<1x256xi32> to vector<1x256xf32>
    %179 = vector.broadcast %178 : vector<1x256xf32> to vector<8x256xf32>
    %180 = arith.mulf %157, %179 : vector<8x256xf32>
    %c16_i32_70 = arith.constant 16 : i32
    %181 = tpu.dynamic_rotate %10 by %c16_i32_70 dim 1 : vector<8x256xf32>, i32 -> vector<8x256xf32>
    %c-1_i32_71 = arith.constant -1 : i32
    %182 = vector.broadcast %c-1_i32_71 : i32 to vector<1x256xi32>
    %183 = arith.addi %2, %182 : vector<1x256xi32>
    %c0_i32_72 = arith.constant 0 : i32
    %184 = vector.broadcast %c0_i32_72 : i32 to vector<1x256xi32>
    %185 = arith.cmpi sge, %183, %184 : vector<1x256xi32>
    %c-1_i32_73 = arith.constant -1 : i32
    %186 = vector.broadcast %c-1_i32_73 : i32 to vector<1x256xi32>
    %187 = arith.addi %2, %186 : vector<1x256xi32>
    %c16_i32_74 = arith.constant 16 : i32
    %188 = vector.broadcast %c16_i32_74 : i32 to vector<1x256xi32>
    %189 = arith.cmpi slt, %187, %188 : vector<1x256xi32>
    %190 = arith.andi %185, %189 : vector<1x256xi1>
    %c0_i32_75 = arith.constant 0 : i32
    %191 = vector.broadcast %c0_i32_75 : i32 to vector<1x256xi32>
    %192 = arith.addi %4, %191 : vector<1x256xi32>
    %c0_i32_76 = arith.constant 0 : i32
    %193 = vector.broadcast %c0_i32_76 : i32 to vector<1x256xi32>
    %194 = arith.cmpi sge, %192, %193 : vector<1x256xi32>
    %195 = arith.andi %190, %194 : vector<1x256xi1>
    %c0_i32_77 = arith.constant 0 : i32
    %196 = vector.broadcast %c0_i32_77 : i32 to vector<1x256xi32>
    %197 = arith.addi %4, %196 : vector<1x256xi32>
    %c16_i32_78 = arith.constant 16 : i32
    %198 = vector.broadcast %c16_i32_78 : i32 to vector<1x256xi32>
    %199 = arith.cmpi slt, %197, %198 : vector<1x256xi32>
    %200 = arith.andi %195, %199 : vector<1x256xi1>
    %201 = arith.extui %200 : vector<1x256xi1> to vector<1x256xi32>
    %202 = arith.sitofp %201 : vector<1x256xi32> to vector<1x256xf32>
    %203 = vector.broadcast %202 : vector<1x256xf32> to vector<8x256xf32>
    %204 = arith.mulf %181, %203 : vector<8x256xf32>
    %c16_i32_79 = arith.constant 16 : i32
    %205 = tpu.dynamic_rotate %12 by %c16_i32_79 dim 1 : vector<8x256xf32>, i32 -> vector<8x256xf32>
    %c-1_i32_80 = arith.constant -1 : i32
    %206 = vector.broadcast %c-1_i32_80 : i32 to vector<1x256xi32>
    %207 = arith.addi %2, %206 : vector<1x256xi32>
    %c0_i32_81 = arith.constant 0 : i32
    %208 = vector.broadcast %c0_i32_81 : i32 to vector<1x256xi32>
    %209 = arith.cmpi sge, %207, %208 : vector<1x256xi32>
    %c-1_i32_82 = arith.constant -1 : i32
    %210 = vector.broadcast %c-1_i32_82 : i32 to vector<1x256xi32>
    %211 = arith.addi %2, %210 : vector<1x256xi32>
    %c16_i32_83 = arith.constant 16 : i32
    %212 = vector.broadcast %c16_i32_83 : i32 to vector<1x256xi32>
    %213 = arith.cmpi slt, %211, %212 : vector<1x256xi32>
    %214 = arith.andi %209, %213 : vector<1x256xi1>
    %c0_i32_84 = arith.constant 0 : i32
    %215 = vector.broadcast %c0_i32_84 : i32 to vector<1x256xi32>
    %216 = arith.addi %4, %215 : vector<1x256xi32>
    %c0_i32_85 = arith.constant 0 : i32
    %217 = vector.broadcast %c0_i32_85 : i32 to vector<1x256xi32>
    %218 = arith.cmpi sge, %216, %217 : vector<1x256xi32>
    %219 = arith.andi %214, %218 : vector<1x256xi1>
    %c0_i32_86 = arith.constant 0 : i32
    %220 = vector.broadcast %c0_i32_86 : i32 to vector<1x256xi32>
    %221 = arith.addi %4, %220 : vector<1x256xi32>
    %c16_i32_87 = arith.constant 16 : i32
    %222 = vector.broadcast %c16_i32_87 : i32 to vector<1x256xi32>
    %223 = arith.cmpi slt, %221, %222 : vector<1x256xi32>
    %224 = arith.andi %219, %223 : vector<1x256xi1>
    %225 = arith.extui %224 : vector<1x256xi1> to vector<1x256xi32>
    %226 = arith.sitofp %225 : vector<1x256xi32> to vector<1x256xf32>
    %227 = vector.broadcast %226 : vector<1x256xf32> to vector<8x256xf32>
    %228 = arith.mulf %205, %227 : vector<8x256xf32>
    %c15_i32_88 = arith.constant 15 : i32
    %229 = tpu.dynamic_rotate %10 by %c15_i32_88 dim 1 : vector<8x256xf32>, i32 -> vector<8x256xf32>
    %c-1_i32_89 = arith.constant -1 : i32
    %230 = vector.broadcast %c-1_i32_89 : i32 to vector<1x256xi32>
    %231 = arith.addi %2, %230 : vector<1x256xi32>
    %c0_i32_90 = arith.constant 0 : i32
    %232 = vector.broadcast %c0_i32_90 : i32 to vector<1x256xi32>
    %233 = arith.cmpi sge, %231, %232 : vector<1x256xi32>
    %c-1_i32_91 = arith.constant -1 : i32
    %234 = vector.broadcast %c-1_i32_91 : i32 to vector<1x256xi32>
    %235 = arith.addi %2, %234 : vector<1x256xi32>
    %c16_i32_92 = arith.constant 16 : i32
    %236 = vector.broadcast %c16_i32_92 : i32 to vector<1x256xi32>
    %237 = arith.cmpi slt, %235, %236 : vector<1x256xi32>
    %238 = arith.andi %233, %237 : vector<1x256xi1>
    %c1_i32_93 = arith.constant 1 : i32
    %239 = vector.broadcast %c1_i32_93 : i32 to vector<1x256xi32>
    %240 = arith.addi %4, %239 : vector<1x256xi32>
    %c0_i32_94 = arith.constant 0 : i32
    %241 = vector.broadcast %c0_i32_94 : i32 to vector<1x256xi32>
    %242 = arith.cmpi sge, %240, %241 : vector<1x256xi32>
    %243 = arith.andi %238, %242 : vector<1x256xi1>
    %c1_i32_95 = arith.constant 1 : i32
    %244 = vector.broadcast %c1_i32_95 : i32 to vector<1x256xi32>
    %245 = arith.addi %4, %244 : vector<1x256xi32>
    %c16_i32_96 = arith.constant 16 : i32
    %246 = vector.broadcast %c16_i32_96 : i32 to vector<1x256xi32>
    %247 = arith.cmpi slt, %245, %246 : vector<1x256xi32>
    %248 = arith.andi %243, %247 : vector<1x256xi1>
    %249 = arith.extui %248 : vector<1x256xi1> to vector<1x256xi32>
    %250 = arith.sitofp %249 : vector<1x256xi32> to vector<1x256xf32>
    %251 = vector.broadcast %250 : vector<1x256xf32> to vector<8x256xf32>
    %252 = arith.mulf %229, %251 : vector<8x256xf32>
    %c1_i32_97 = arith.constant 1 : i32
    %253 = tpu.dynamic_rotate %6 by %c1_i32_97 dim 1 : vector<8x256xf32>, i32 -> vector<8x256xf32>
    %c0_i32_98 = arith.constant 0 : i32
    %254 = vector.broadcast %c0_i32_98 : i32 to vector<1x256xi32>
    %255 = arith.addi %2, %254 : vector<1x256xi32>
    %c0_i32_99 = arith.constant 0 : i32
    %256 = vector.broadcast %c0_i32_99 : i32 to vector<1x256xi32>
    %257 = arith.cmpi sge, %255, %256 : vector<1x256xi32>
    %c0_i32_100 = arith.constant 0 : i32
    %258 = vector.broadcast %c0_i32_100 : i32 to vector<1x256xi32>
    %259 = arith.addi %2, %258 : vector<1x256xi32>
    %c16_i32_101 = arith.constant 16 : i32
    %260 = vector.broadcast %c16_i32_101 : i32 to vector<1x256xi32>
    %261 = arith.cmpi slt, %259, %260 : vector<1x256xi32>
    %262 = arith.andi %257, %261 : vector<1x256xi1>
    %c-1_i32_102 = arith.constant -1 : i32
    %263 = vector.broadcast %c-1_i32_102 : i32 to vector<1x256xi32>
    %264 = arith.addi %4, %263 : vector<1x256xi32>
    %c0_i32_103 = arith.constant 0 : i32
    %265 = vector.broadcast %c0_i32_103 : i32 to vector<1x256xi32>
    %266 = arith.cmpi sge, %264, %265 : vector<1x256xi32>
    %267 = arith.andi %262, %266 : vector<1x256xi1>
    %c-1_i32_104 = arith.constant -1 : i32
    %268 = vector.broadcast %c-1_i32_104 : i32 to vector<1x256xi32>
    %269 = arith.addi %4, %268 : vector<1x256xi32>
    %c16_i32_105 = arith.constant 16 : i32
    %270 = vector.broadcast %c16_i32_105 : i32 to vector<1x256xi32>
    %271 = arith.cmpi slt, %269, %270 : vector<1x256xi32>
    %272 = arith.andi %267, %271 : vector<1x256xi1>
    %273 = arith.extui %272 : vector<1x256xi1> to vector<1x256xi32>
    %274 = arith.sitofp %273 : vector<1x256xi32> to vector<1x256xf32>
    %275 = vector.broadcast %274 : vector<1x256xf32> to vector<8x256xf32>
    %276 = arith.mulf %253, %275 : vector<8x256xf32>
    %c1_i32_106 = arith.constant 1 : i32
    %277 = tpu.dynamic_rotate %8 by %c1_i32_106 dim 1 : vector<8x256xf32>, i32 -> vector<8x256xf32>
    %c0_i32_107 = arith.constant 0 : i32
    %278 = vector.broadcast %c0_i32_107 : i32 to vector<1x256xi32>
    %279 = arith.addi %2, %278 : vector<1x256xi32>
    %c0_i32_108 = arith.constant 0 : i32
    %280 = vector.broadcast %c0_i32_108 : i32 to vector<1x256xi32>
    %281 = arith.cmpi sge, %279, %280 : vector<1x256xi32>
    %c0_i32_109 = arith.constant 0 : i32
    %282 = vector.broadcast %c0_i32_109 : i32 to vector<1x256xi32>
    %283 = arith.addi %2, %282 : vector<1x256xi32>
    %c16_i32_110 = arith.constant 16 : i32
    %284 = vector.broadcast %c16_i32_110 : i32 to vector<1x256xi32>
    %285 = arith.cmpi slt, %283, %284 : vector<1x256xi32>
    %286 = arith.andi %281, %285 : vector<1x256xi1>
    %c-1_i32_111 = arith.constant -1 : i32
    %287 = vector.broadcast %c-1_i32_111 : i32 to vector<1x256xi32>
    %288 = arith.addi %4, %287 : vector<1x256xi32>
    %c0_i32_112 = arith.constant 0 : i32
    %289 = vector.broadcast %c0_i32_112 : i32 to vector<1x256xi32>
    %290 = arith.cmpi sge, %288, %289 : vector<1x256xi32>
    %291 = arith.andi %286, %290 : vector<1x256xi1>
    %c-1_i32_113 = arith.constant -1 : i32
    %292 = vector.broadcast %c-1_i32_113 : i32 to vector<1x256xi32>
    %293 = arith.addi %4, %292 : vector<1x256xi32>
    %c16_i32_114 = arith.constant 16 : i32
    %294 = vector.broadcast %c16_i32_114 : i32 to vector<1x256xi32>
    %295 = arith.cmpi slt, %293, %294 : vector<1x256xi32>
    %296 = arith.andi %291, %295 : vector<1x256xi1>
    %297 = arith.extui %296 : vector<1x256xi1> to vector<1x256xi32>
    %298 = arith.sitofp %297 : vector<1x256xi32> to vector<1x256xf32>
    %299 = vector.broadcast %298 : vector<1x256xf32> to vector<8x256xf32>
    %300 = arith.mulf %277, %299 : vector<8x256xf32>
    %c0_i32_115 = arith.constant 0 : i32
    %301 = vector.broadcast %c0_i32_115 : i32 to vector<1x256xi32>
    %302 = arith.addi %2, %301 : vector<1x256xi32>
    %c0_i32_116 = arith.constant 0 : i32
    %303 = vector.broadcast %c0_i32_116 : i32 to vector<1x256xi32>
    %304 = arith.cmpi sge, %302, %303 : vector<1x256xi32>
    %c0_i32_117 = arith.constant 0 : i32
    %305 = vector.broadcast %c0_i32_117 : i32 to vector<1x256xi32>
    %306 = arith.addi %2, %305 : vector<1x256xi32>
    %c16_i32_118 = arith.constant 16 : i32
    %307 = vector.broadcast %c16_i32_118 : i32 to vector<1x256xi32>
    %308 = arith.cmpi slt, %306, %307 : vector<1x256xi32>
    %309 = arith.andi %304, %308 : vector<1x256xi1>
    %c0_i32_119 = arith.constant 0 : i32
    %310 = vector.broadcast %c0_i32_119 : i32 to vector<1x256xi32>
    %311 = arith.addi %4, %310 : vector<1x256xi32>
    %c0_i32_120 = arith.constant 0 : i32
    %312 = vector.broadcast %c0_i32_120 : i32 to vector<1x256xi32>
    %313 = arith.cmpi sge, %311, %312 : vector<1x256xi32>
    %314 = arith.andi %309, %313 : vector<1x256xi1>
    %c0_i32_121 = arith.constant 0 : i32
    %315 = vector.broadcast %c0_i32_121 : i32 to vector<1x256xi32>
    %316 = arith.addi %4, %315 : vector<1x256xi32>
    %c16_i32_122 = arith.constant 16 : i32
    %317 = vector.broadcast %c16_i32_122 : i32 to vector<1x256xi32>
    %318 = arith.cmpi slt, %316, %317 : vector<1x256xi32>
    %319 = arith.andi %314, %318 : vector<1x256xi1>
    %320 = arith.extui %319 : vector<1x256xi1> to vector<1x256xi32>
    %321 = arith.sitofp %320 : vector<1x256xi32> to vector<1x256xf32>
    %322 = vector.broadcast %321 : vector<1x256xf32> to vector<8x256xf32>
    %323 = arith.mulf %6, %322 : vector<8x256xf32>
    %c0_i32_123 = arith.constant 0 : i32
    %324 = vector.broadcast %c0_i32_123 : i32 to vector<1x256xi32>
    %325 = arith.addi %2, %324 : vector<1x256xi32>
    %c0_i32_124 = arith.constant 0 : i32
    %326 = vector.broadcast %c0_i32_124 : i32 to vector<1x256xi32>
    %327 = arith.cmpi sge, %325, %326 : vector<1x256xi32>
    %c0_i32_125 = arith.constant 0 : i32
    %328 = vector.broadcast %c0_i32_125 : i32 to vector<1x256xi32>
    %329 = arith.addi %2, %328 : vector<1x256xi32>
    %c16_i32_126 = arith.constant 16 : i32
    %330 = vector.broadcast %c16_i32_126 : i32 to vector<1x256xi32>
    %331 = arith.cmpi slt, %329, %330 : vector<1x256xi32>
    %332 = arith.andi %327, %331 : vector<1x256xi1>
    %c0_i32_127 = arith.constant 0 : i32
    %333 = vector.broadcast %c0_i32_127 : i32 to vector<1x256xi32>
    %334 = arith.addi %4, %333 : vector<1x256xi32>
    %c0_i32_128 = arith.constant 0 : i32
    %335 = vector.broadcast %c0_i32_128 : i32 to vector<1x256xi32>
    %336 = arith.cmpi sge, %334, %335 : vector<1x256xi32>
    %337 = arith.andi %332, %336 : vector<1x256xi1>
    %c0_i32_129 = arith.constant 0 : i32
    %338 = vector.broadcast %c0_i32_129 : i32 to vector<1x256xi32>
    %339 = arith.addi %4, %338 : vector<1x256xi32>
    %c16_i32_130 = arith.constant 16 : i32
    %340 = vector.broadcast %c16_i32_130 : i32 to vector<1x256xi32>
    %341 = arith.cmpi slt, %339, %340 : vector<1x256xi32>
    %342 = arith.andi %337, %341 : vector<1x256xi1>
    %343 = arith.extui %342 : vector<1x256xi1> to vector<1x256xi32>
    %344 = arith.sitofp %343 : vector<1x256xi32> to vector<1x256xf32>
    %345 = vector.broadcast %344 : vector<1x256xf32> to vector<8x256xf32>
    %346 = arith.mulf %8, %345 : vector<8x256xf32>
    %c255_i32 = arith.constant 255 : i32
    %347 = tpu.dynamic_rotate %6 by %c255_i32 dim 1 : vector<8x256xf32>, i32 -> vector<8x256xf32>
    %c0_i32_131 = arith.constant 0 : i32
    %348 = vector.broadcast %c0_i32_131 : i32 to vector<1x256xi32>
    %349 = arith.addi %2, %348 : vector<1x256xi32>
    %c0_i32_132 = arith.constant 0 : i32
    %350 = vector.broadcast %c0_i32_132 : i32 to vector<1x256xi32>
    %351 = arith.cmpi sge, %349, %350 : vector<1x256xi32>
    %c0_i32_133 = arith.constant 0 : i32
    %352 = vector.broadcast %c0_i32_133 : i32 to vector<1x256xi32>
    %353 = arith.addi %2, %352 : vector<1x256xi32>
    %c16_i32_134 = arith.constant 16 : i32
    %354 = vector.broadcast %c16_i32_134 : i32 to vector<1x256xi32>
    %355 = arith.cmpi slt, %353, %354 : vector<1x256xi32>
    %356 = arith.andi %351, %355 : vector<1x256xi1>
    %c1_i32_135 = arith.constant 1 : i32
    %357 = vector.broadcast %c1_i32_135 : i32 to vector<1x256xi32>
    %358 = arith.addi %4, %357 : vector<1x256xi32>
    %c0_i32_136 = arith.constant 0 : i32
    %359 = vector.broadcast %c0_i32_136 : i32 to vector<1x256xi32>
    %360 = arith.cmpi sge, %358, %359 : vector<1x256xi32>
    %361 = arith.andi %356, %360 : vector<1x256xi1>
    %c1_i32_137 = arith.constant 1 : i32
    %362 = vector.broadcast %c1_i32_137 : i32 to vector<1x256xi32>
    %363 = arith.addi %4, %362 : vector<1x256xi32>
    %c16_i32_138 = arith.constant 16 : i32
    %364 = vector.broadcast %c16_i32_138 : i32 to vector<1x256xi32>
    %365 = arith.cmpi slt, %363, %364 : vector<1x256xi32>
    %366 = arith.andi %361, %365 : vector<1x256xi1>
    %367 = arith.extui %366 : vector<1x256xi1> to vector<1x256xi32>
    %368 = arith.sitofp %367 : vector<1x256xi32> to vector<1x256xf32>
    %369 = vector.broadcast %368 : vector<1x256xf32> to vector<8x256xf32>
    %370 = arith.mulf %347, %369 : vector<8x256xf32>
    %c1_i32_139 = arith.constant 1 : i32
    %371 = tpu.dynamic_rotate %10 by %c1_i32_139 dim 1 : vector<8x256xf32>, i32 -> vector<8x256xf32>
    %c0_i32_140 = arith.constant 0 : i32
    %372 = vector.broadcast %c0_i32_140 : i32 to vector<1x256xi32>
    %373 = arith.addi %2, %372 : vector<1x256xi32>
    %c0_i32_141 = arith.constant 0 : i32
    %374 = vector.broadcast %c0_i32_141 : i32 to vector<1x256xi32>
    %375 = arith.cmpi sge, %373, %374 : vector<1x256xi32>
    %c0_i32_142 = arith.constant 0 : i32
    %376 = vector.broadcast %c0_i32_142 : i32 to vector<1x256xi32>
    %377 = arith.addi %2, %376 : vector<1x256xi32>
    %c16_i32_143 = arith.constant 16 : i32
    %378 = vector.broadcast %c16_i32_143 : i32 to vector<1x256xi32>
    %379 = arith.cmpi slt, %377, %378 : vector<1x256xi32>
    %380 = arith.andi %375, %379 : vector<1x256xi1>
    %c-1_i32_144 = arith.constant -1 : i32
    %381 = vector.broadcast %c-1_i32_144 : i32 to vector<1x256xi32>
    %382 = arith.addi %4, %381 : vector<1x256xi32>
    %c0_i32_145 = arith.constant 0 : i32
    %383 = vector.broadcast %c0_i32_145 : i32 to vector<1x256xi32>
    %384 = arith.cmpi sge, %382, %383 : vector<1x256xi32>
    %385 = arith.andi %380, %384 : vector<1x256xi1>
    %c-1_i32_146 = arith.constant -1 : i32
    %386 = vector.broadcast %c-1_i32_146 : i32 to vector<1x256xi32>
    %387 = arith.addi %4, %386 : vector<1x256xi32>
    %c16_i32_147 = arith.constant 16 : i32
    %388 = vector.broadcast %c16_i32_147 : i32 to vector<1x256xi32>
    %389 = arith.cmpi slt, %387, %388 : vector<1x256xi32>
    %390 = arith.andi %385, %389 : vector<1x256xi1>
    %391 = arith.extui %390 : vector<1x256xi1> to vector<1x256xi32>
    %392 = arith.sitofp %391 : vector<1x256xi32> to vector<1x256xf32>
    %393 = vector.broadcast %392 : vector<1x256xf32> to vector<8x256xf32>
    %394 = arith.mulf %371, %393 : vector<8x256xf32>
    %c1_i32_148 = arith.constant 1 : i32
    %395 = tpu.dynamic_rotate %12 by %c1_i32_148 dim 1 : vector<8x256xf32>, i32 -> vector<8x256xf32>
    %c0_i32_149 = arith.constant 0 : i32
    %396 = vector.broadcast %c0_i32_149 : i32 to vector<1x256xi32>
    %397 = arith.addi %2, %396 : vector<1x256xi32>
    %c0_i32_150 = arith.constant 0 : i32
    %398 = vector.broadcast %c0_i32_150 : i32 to vector<1x256xi32>
    %399 = arith.cmpi sge, %397, %398 : vector<1x256xi32>
    %c0_i32_151 = arith.constant 0 : i32
    %400 = vector.broadcast %c0_i32_151 : i32 to vector<1x256xi32>
    %401 = arith.addi %2, %400 : vector<1x256xi32>
    %c16_i32_152 = arith.constant 16 : i32
    %402 = vector.broadcast %c16_i32_152 : i32 to vector<1x256xi32>
    %403 = arith.cmpi slt, %401, %402 : vector<1x256xi32>
    %404 = arith.andi %399, %403 : vector<1x256xi1>
    %c-1_i32_153 = arith.constant -1 : i32
    %405 = vector.broadcast %c-1_i32_153 : i32 to vector<1x256xi32>
    %406 = arith.addi %4, %405 : vector<1x256xi32>
    %c0_i32_154 = arith.constant 0 : i32
    %407 = vector.broadcast %c0_i32_154 : i32 to vector<1x256xi32>
    %408 = arith.cmpi sge, %406, %407 : vector<1x256xi32>
    %409 = arith.andi %404, %408 : vector<1x256xi1>
    %c-1_i32_155 = arith.constant -1 : i32
    %410 = vector.broadcast %c-1_i32_155 : i32 to vector<1x256xi32>
    %411 = arith.addi %4, %410 : vector<1x256xi32>
    %c16_i32_156 = arith.constant 16 : i32
    %412 = vector.broadcast %c16_i32_156 : i32 to vector<1x256xi32>
    %413 = arith.cmpi slt, %411, %412 : vector<1x256xi32>
    %414 = arith.andi %409, %413 : vector<1x256xi1>
    %415 = arith.extui %414 : vector<1x256xi1> to vector<1x256xi32>
    %416 = arith.sitofp %415 : vector<1x256xi32> to vector<1x256xf32>
    %417 = vector.broadcast %416 : vector<1x256xf32> to vector<8x256xf32>
    %418 = arith.mulf %395, %417 : vector<8x256xf32>
    %c0_i32_157 = arith.constant 0 : i32
    %419 = vector.broadcast %c0_i32_157 : i32 to vector<1x256xi32>
    %420 = arith.addi %2, %419 : vector<1x256xi32>
    %c0_i32_158 = arith.constant 0 : i32
    %421 = vector.broadcast %c0_i32_158 : i32 to vector<1x256xi32>
    %422 = arith.cmpi sge, %420, %421 : vector<1x256xi32>
    %c0_i32_159 = arith.constant 0 : i32
    %423 = vector.broadcast %c0_i32_159 : i32 to vector<1x256xi32>
    %424 = arith.addi %2, %423 : vector<1x256xi32>
    %c16_i32_160 = arith.constant 16 : i32
    %425 = vector.broadcast %c16_i32_160 : i32 to vector<1x256xi32>
    %426 = arith.cmpi slt, %424, %425 : vector<1x256xi32>
    %427 = arith.andi %422, %426 : vector<1x256xi1>
    %c0_i32_161 = arith.constant 0 : i32
    %428 = vector.broadcast %c0_i32_161 : i32 to vector<1x256xi32>
    %429 = arith.addi %4, %428 : vector<1x256xi32>
    %c0_i32_162 = arith.constant 0 : i32
    %430 = vector.broadcast %c0_i32_162 : i32 to vector<1x256xi32>
    %431 = arith.cmpi sge, %429, %430 : vector<1x256xi32>
    %432 = arith.andi %427, %431 : vector<1x256xi1>
    %c0_i32_163 = arith.constant 0 : i32
    %433 = vector.broadcast %c0_i32_163 : i32 to vector<1x256xi32>
    %434 = arith.addi %4, %433 : vector<1x256xi32>
    %c16_i32_164 = arith.constant 16 : i32
    %435 = vector.broadcast %c16_i32_164 : i32 to vector<1x256xi32>
    %436 = arith.cmpi slt, %434, %435 : vector<1x256xi32>
    %437 = arith.andi %432, %436 : vector<1x256xi1>
    %438 = arith.extui %437 : vector<1x256xi1> to vector<1x256xi32>
    %439 = arith.sitofp %438 : vector<1x256xi32> to vector<1x256xf32>
    %440 = vector.broadcast %439 : vector<1x256xf32> to vector<8x256xf32>
    %441 = arith.mulf %10, %440 : vector<8x256xf32>
    %c0_i32_165 = arith.constant 0 : i32
    %442 = vector.broadcast %c0_i32_165 : i32 to vector<1x256xi32>
    %443 = arith.addi %2, %442 : vector<1x256xi32>
    %c0_i32_166 = arith.constant 0 : i32
    %444 = vector.broadcast %c0_i32_166 : i32 to vector<1x256xi32>
    %445 = arith.cmpi sge, %443, %444 : vector<1x256xi32>
    %c0_i32_167 = arith.constant 0 : i32
    %446 = vector.broadcast %c0_i32_167 : i32 to vector<1x256xi32>
    %447 = arith.addi %2, %446 : vector<1x256xi32>
    %c16_i32_168 = arith.constant 16 : i32
    %448 = vector.broadcast %c16_i32_168 : i32 to vector<1x256xi32>
    %449 = arith.cmpi slt, %447, %448 : vector<1x256xi32>
    %450 = arith.andi %445, %449 : vector<1x256xi1>
    %c0_i32_169 = arith.constant 0 : i32
    %451 = vector.broadcast %c0_i32_169 : i32 to vector<1x256xi32>
    %452 = arith.addi %4, %451 : vector<1x256xi32>
    %c0_i32_170 = arith.constant 0 : i32
    %453 = vector.broadcast %c0_i32_170 : i32 to vector<1x256xi32>
    %454 = arith.cmpi sge, %452, %453 : vector<1x256xi32>
    %455 = arith.andi %450, %454 : vector<1x256xi1>
    %c0_i32_171 = arith.constant 0 : i32
    %456 = vector.broadcast %c0_i32_171 : i32 to vector<1x256xi32>
    %457 = arith.addi %4, %456 : vector<1x256xi32>
    %c16_i32_172 = arith.constant 16 : i32
    %458 = vector.broadcast %c16_i32_172 : i32 to vector<1x256xi32>
    %459 = arith.cmpi slt, %457, %458 : vector<1x256xi32>
    %460 = arith.andi %455, %459 : vector<1x256xi1>
    %461 = arith.extui %460 : vector<1x256xi1> to vector<1x256xi32>
    %462 = arith.sitofp %461 : vector<1x256xi32> to vector<1x256xf32>
    %463 = vector.broadcast %462 : vector<1x256xf32> to vector<8x256xf32>
    %464 = arith.mulf %12, %463 : vector<8x256xf32>
    %c255_i32_173 = arith.constant 255 : i32
    %465 = tpu.dynamic_rotate %10 by %c255_i32_173 dim 1 : vector<8x256xf32>, i32 -> vector<8x256xf32>
    %c0_i32_174 = arith.constant 0 : i32
    %466 = vector.broadcast %c0_i32_174 : i32 to vector<1x256xi32>
    %467 = arith.addi %2, %466 : vector<1x256xi32>
    %c0_i32_175 = arith.constant 0 : i32
    %468 = vector.broadcast %c0_i32_175 : i32 to vector<1x256xi32>
    %469 = arith.cmpi sge, %467, %468 : vector<1x256xi32>
    %c0_i32_176 = arith.constant 0 : i32
    %470 = vector.broadcast %c0_i32_176 : i32 to vector<1x256xi32>
    %471 = arith.addi %2, %470 : vector<1x256xi32>
    %c16_i32_177 = arith.constant 16 : i32
    %472 = vector.broadcast %c16_i32_177 : i32 to vector<1x256xi32>
    %473 = arith.cmpi slt, %471, %472 : vector<1x256xi32>
    %474 = arith.andi %469, %473 : vector<1x256xi1>
    %c1_i32_178 = arith.constant 1 : i32
    %475 = vector.broadcast %c1_i32_178 : i32 to vector<1x256xi32>
    %476 = arith.addi %4, %475 : vector<1x256xi32>
    %c0_i32_179 = arith.constant 0 : i32
    %477 = vector.broadcast %c0_i32_179 : i32 to vector<1x256xi32>
    %478 = arith.cmpi sge, %476, %477 : vector<1x256xi32>
    %479 = arith.andi %474, %478 : vector<1x256xi1>
    %c1_i32_180 = arith.constant 1 : i32
    %480 = vector.broadcast %c1_i32_180 : i32 to vector<1x256xi32>
    %481 = arith.addi %4, %480 : vector<1x256xi32>
    %c16_i32_181 = arith.constant 16 : i32
    %482 = vector.broadcast %c16_i32_181 : i32 to vector<1x256xi32>
    %483 = arith.cmpi slt, %481, %482 : vector<1x256xi32>
    %484 = arith.andi %479, %483 : vector<1x256xi1>
    %485 = arith.extui %484 : vector<1x256xi1> to vector<1x256xi32>
    %486 = arith.sitofp %485 : vector<1x256xi32> to vector<1x256xf32>
    %487 = vector.broadcast %486 : vector<1x256xf32> to vector<8x256xf32>
    %488 = arith.mulf %465, %487 : vector<8x256xf32>
    %c241_i32 = arith.constant 241 : i32
    %489 = tpu.dynamic_rotate %6 by %c241_i32 dim 1 : vector<8x256xf32>, i32 -> vector<8x256xf32>
    %c1_i32_182 = arith.constant 1 : i32
    %490 = vector.broadcast %c1_i32_182 : i32 to vector<1x256xi32>
    %491 = arith.addi %2, %490 : vector<1x256xi32>
    %c0_i32_183 = arith.constant 0 : i32
    %492 = vector.broadcast %c0_i32_183 : i32 to vector<1x256xi32>
    %493 = arith.cmpi sge, %491, %492 : vector<1x256xi32>
    %c1_i32_184 = arith.constant 1 : i32
    %494 = vector.broadcast %c1_i32_184 : i32 to vector<1x256xi32>
    %495 = arith.addi %2, %494 : vector<1x256xi32>
    %c16_i32_185 = arith.constant 16 : i32
    %496 = vector.broadcast %c16_i32_185 : i32 to vector<1x256xi32>
    %497 = arith.cmpi slt, %495, %496 : vector<1x256xi32>
    %498 = arith.andi %493, %497 : vector<1x256xi1>
    %c-1_i32_186 = arith.constant -1 : i32
    %499 = vector.broadcast %c-1_i32_186 : i32 to vector<1x256xi32>
    %500 = arith.addi %4, %499 : vector<1x256xi32>
    %c0_i32_187 = arith.constant 0 : i32
    %501 = vector.broadcast %c0_i32_187 : i32 to vector<1x256xi32>
    %502 = arith.cmpi sge, %500, %501 : vector<1x256xi32>
    %503 = arith.andi %498, %502 : vector<1x256xi1>
    %c-1_i32_188 = arith.constant -1 : i32
    %504 = vector.broadcast %c-1_i32_188 : i32 to vector<1x256xi32>
    %505 = arith.addi %4, %504 : vector<1x256xi32>
    %c16_i32_189 = arith.constant 16 : i32
    %506 = vector.broadcast %c16_i32_189 : i32 to vector<1x256xi32>
    %507 = arith.cmpi slt, %505, %506 : vector<1x256xi32>
    %508 = arith.andi %503, %507 : vector<1x256xi1>
    %509 = arith.extui %508 : vector<1x256xi1> to vector<1x256xi32>
    %510 = arith.sitofp %509 : vector<1x256xi32> to vector<1x256xf32>
    %511 = vector.broadcast %510 : vector<1x256xf32> to vector<8x256xf32>
    %512 = arith.mulf %489, %511 : vector<8x256xf32>
    %c241_i32_190 = arith.constant 241 : i32
    %513 = tpu.dynamic_rotate %8 by %c241_i32_190 dim 1 : vector<8x256xf32>, i32 -> vector<8x256xf32>
    %c1_i32_191 = arith.constant 1 : i32
    %514 = vector.broadcast %c1_i32_191 : i32 to vector<1x256xi32>
    %515 = arith.addi %2, %514 : vector<1x256xi32>
    %c0_i32_192 = arith.constant 0 : i32
    %516 = vector.broadcast %c0_i32_192 : i32 to vector<1x256xi32>
    %517 = arith.cmpi sge, %515, %516 : vector<1x256xi32>
    %c1_i32_193 = arith.constant 1 : i32
    %518 = vector.broadcast %c1_i32_193 : i32 to vector<1x256xi32>
    %519 = arith.addi %2, %518 : vector<1x256xi32>
    %c16_i32_194 = arith.constant 16 : i32
    %520 = vector.broadcast %c16_i32_194 : i32 to vector<1x256xi32>
    %521 = arith.cmpi slt, %519, %520 : vector<1x256xi32>
    %522 = arith.andi %517, %521 : vector<1x256xi1>
    %c-1_i32_195 = arith.constant -1 : i32
    %523 = vector.broadcast %c-1_i32_195 : i32 to vector<1x256xi32>
    %524 = arith.addi %4, %523 : vector<1x256xi32>
    %c0_i32_196 = arith.constant 0 : i32
    %525 = vector.broadcast %c0_i32_196 : i32 to vector<1x256xi32>
    %526 = arith.cmpi sge, %524, %525 : vector<1x256xi32>
    %527 = arith.andi %522, %526 : vector<1x256xi1>
    %c-1_i32_197 = arith.constant -1 : i32
    %528 = vector.broadcast %c-1_i32_197 : i32 to vector<1x256xi32>
    %529 = arith.addi %4, %528 : vector<1x256xi32>
    %c16_i32_198 = arith.constant 16 : i32
    %530 = vector.broadcast %c16_i32_198 : i32 to vector<1x256xi32>
    %531 = arith.cmpi slt, %529, %530 : vector<1x256xi32>
    %532 = arith.andi %527, %531 : vector<1x256xi1>
    %533 = arith.extui %532 : vector<1x256xi1> to vector<1x256xi32>
    %534 = arith.sitofp %533 : vector<1x256xi32> to vector<1x256xf32>
    %535 = vector.broadcast %534 : vector<1x256xf32> to vector<8x256xf32>
    %536 = arith.mulf %513, %535 : vector<8x256xf32>
    %c240_i32 = arith.constant 240 : i32
    %537 = tpu.dynamic_rotate %6 by %c240_i32 dim 1 : vector<8x256xf32>, i32 -> vector<8x256xf32>
    %c1_i32_199 = arith.constant 1 : i32
    %538 = vector.broadcast %c1_i32_199 : i32 to vector<1x256xi32>
    %539 = arith.addi %2, %538 : vector<1x256xi32>
    %c0_i32_200 = arith.constant 0 : i32
    %540 = vector.broadcast %c0_i32_200 : i32 to vector<1x256xi32>
    %541 = arith.cmpi sge, %539, %540 : vector<1x256xi32>
    %c1_i32_201 = arith.constant 1 : i32
    %542 = vector.broadcast %c1_i32_201 : i32 to vector<1x256xi32>
    %543 = arith.addi %2, %542 : vector<1x256xi32>
    %c16_i32_202 = arith.constant 16 : i32
    %544 = vector.broadcast %c16_i32_202 : i32 to vector<1x256xi32>
    %545 = arith.cmpi slt, %543, %544 : vector<1x256xi32>
    %546 = arith.andi %541, %545 : vector<1x256xi1>
    %c0_i32_203 = arith.constant 0 : i32
    %547 = vector.broadcast %c0_i32_203 : i32 to vector<1x256xi32>
    %548 = arith.addi %4, %547 : vector<1x256xi32>
    %c0_i32_204 = arith.constant 0 : i32
    %549 = vector.broadcast %c0_i32_204 : i32 to vector<1x256xi32>
    %550 = arith.cmpi sge, %548, %549 : vector<1x256xi32>
    %551 = arith.andi %546, %550 : vector<1x256xi1>
    %c0_i32_205 = arith.constant 0 : i32
    %552 = vector.broadcast %c0_i32_205 : i32 to vector<1x256xi32>
    %553 = arith.addi %4, %552 : vector<1x256xi32>
    %c16_i32_206 = arith.constant 16 : i32
    %554 = vector.broadcast %c16_i32_206 : i32 to vector<1x256xi32>
    %555 = arith.cmpi slt, %553, %554 : vector<1x256xi32>
    %556 = arith.andi %551, %555 : vector<1x256xi1>
    %557 = arith.extui %556 : vector<1x256xi1> to vector<1x256xi32>
    %558 = arith.sitofp %557 : vector<1x256xi32> to vector<1x256xf32>
    %559 = vector.broadcast %558 : vector<1x256xf32> to vector<8x256xf32>
    %560 = arith.mulf %537, %559 : vector<8x256xf32>
    %c240_i32_207 = arith.constant 240 : i32
    %561 = tpu.dynamic_rotate %8 by %c240_i32_207 dim 1 : vector<8x256xf32>, i32 -> vector<8x256xf32>
    %c1_i32_208 = arith.constant 1 : i32
    %562 = vector.broadcast %c1_i32_208 : i32 to vector<1x256xi32>
    %563 = arith.addi %2, %562 : vector<1x256xi32>
    %c0_i32_209 = arith.constant 0 : i32
    %564 = vector.broadcast %c0_i32_209 : i32 to vector<1x256xi32>
    %565 = arith.cmpi sge, %563, %564 : vector<1x256xi32>
    %c1_i32_210 = arith.constant 1 : i32
    %566 = vector.broadcast %c1_i32_210 : i32 to vector<1x256xi32>
    %567 = arith.addi %2, %566 : vector<1x256xi32>
    %c16_i32_211 = arith.constant 16 : i32
    %568 = vector.broadcast %c16_i32_211 : i32 to vector<1x256xi32>
    %569 = arith.cmpi slt, %567, %568 : vector<1x256xi32>
    %570 = arith.andi %565, %569 : vector<1x256xi1>
    %c0_i32_212 = arith.constant 0 : i32
    %571 = vector.broadcast %c0_i32_212 : i32 to vector<1x256xi32>
    %572 = arith.addi %4, %571 : vector<1x256xi32>
    %c0_i32_213 = arith.constant 0 : i32
    %573 = vector.broadcast %c0_i32_213 : i32 to vector<1x256xi32>
    %574 = arith.cmpi sge, %572, %573 : vector<1x256xi32>
    %575 = arith.andi %570, %574 : vector<1x256xi1>
    %c0_i32_214 = arith.constant 0 : i32
    %576 = vector.broadcast %c0_i32_214 : i32 to vector<1x256xi32>
    %577 = arith.addi %4, %576 : vector<1x256xi32>
    %c16_i32_215 = arith.constant 16 : i32
    %578 = vector.broadcast %c16_i32_215 : i32 to vector<1x256xi32>
    %579 = arith.cmpi slt, %577, %578 : vector<1x256xi32>
    %580 = arith.andi %575, %579 : vector<1x256xi1>
    %581 = arith.extui %580 : vector<1x256xi1> to vector<1x256xi32>
    %582 = arith.sitofp %581 : vector<1x256xi32> to vector<1x256xf32>
    %583 = vector.broadcast %582 : vector<1x256xf32> to vector<8x256xf32>
    %584 = arith.mulf %561, %583 : vector<8x256xf32>
    %c239_i32 = arith.constant 239 : i32
    %585 = tpu.dynamic_rotate %6 by %c239_i32 dim 1 : vector<8x256xf32>, i32 -> vector<8x256xf32>
    %c1_i32_216 = arith.constant 1 : i32
    %586 = vector.broadcast %c1_i32_216 : i32 to vector<1x256xi32>
    %587 = arith.addi %2, %586 : vector<1x256xi32>
    %c0_i32_217 = arith.constant 0 : i32
    %588 = vector.broadcast %c0_i32_217 : i32 to vector<1x256xi32>
    %589 = arith.cmpi sge, %587, %588 : vector<1x256xi32>
    %c1_i32_218 = arith.constant 1 : i32
    %590 = vector.broadcast %c1_i32_218 : i32 to vector<1x256xi32>
    %591 = arith.addi %2, %590 : vector<1x256xi32>
    %c16_i32_219 = arith.constant 16 : i32
    %592 = vector.broadcast %c16_i32_219 : i32 to vector<1x256xi32>
    %593 = arith.cmpi slt, %591, %592 : vector<1x256xi32>
    %594 = arith.andi %589, %593 : vector<1x256xi1>
    %c1_i32_220 = arith.constant 1 : i32
    %595 = vector.broadcast %c1_i32_220 : i32 to vector<1x256xi32>
    %596 = arith.addi %4, %595 : vector<1x256xi32>
    %c0_i32_221 = arith.constant 0 : i32
    %597 = vector.broadcast %c0_i32_221 : i32 to vector<1x256xi32>
    %598 = arith.cmpi sge, %596, %597 : vector<1x256xi32>
    %599 = arith.andi %594, %598 : vector<1x256xi1>
    %c1_i32_222 = arith.constant 1 : i32
    %600 = vector.broadcast %c1_i32_222 : i32 to vector<1x256xi32>
    %601 = arith.addi %4, %600 : vector<1x256xi32>
    %c16_i32_223 = arith.constant 16 : i32
    %602 = vector.broadcast %c16_i32_223 : i32 to vector<1x256xi32>
    %603 = arith.cmpi slt, %601, %602 : vector<1x256xi32>
    %604 = arith.andi %599, %603 : vector<1x256xi1>
    %605 = arith.extui %604 : vector<1x256xi1> to vector<1x256xi32>
    %606 = arith.sitofp %605 : vector<1x256xi32> to vector<1x256xf32>
    %607 = vector.broadcast %606 : vector<1x256xf32> to vector<8x256xf32>
    %608 = arith.mulf %585, %607 : vector<8x256xf32>
    %609 = tpu.concatenate %36, %60, %84, %108, %132, %156, %180, %204, %228, %252, %276, %300, %323, %346, %370, %394 in 0 : vector<8x256xf32>, vector<8x256xf32>, vector<8x256xf32>, vector<8x256xf32>, vector<8x256xf32>, vector<8x256xf32>, vector<8x256xf32>, vector<8x256xf32>, vector<8x256xf32>, vector<8x256xf32>, vector<8x256xf32>, vector<8x256xf32>, vector<8x256xf32>, vector<8x256xf32>, vector<8x256xf32>, vector<8x256xf32> -> vector<128x256xf32>
    %610 = tpu.concatenate %418, %441, %464, %488, %512, %536, %560, %584, %608 in 0 : vector<8x256xf32>, vector<8x256xf32>, vector<8x256xf32>, vector<8x256xf32>, vector<8x256xf32>, vector<8x256xf32>, vector<8x256xf32>, vector<8x256xf32>, vector<8x256xf32> -> vector<72x256xf32>
    %611 = tpu.concatenate %609, %610 in 0 : vector<128x256xf32>, vector<72x256xf32> -> vector<200x256xf32>
    %c0_224 = arith.constant 0 : index
    %c0_225 = arith.constant 0 : index
    %612 = vector.load %arg2[%c0_224, %c0_225] : memref<32x200xf32, #tpu.memory_space<vmem>>, vector<32x200xf32>
    %cst = arith.constant dense<0.000000e+00> : vector<32x256xf32>
    %613 = tpu.matmul %612, %611, %cst {dimension_numbers = #tpu.dot_dimension_numbers<[1], [0], [0], [1], [0, 0, 1, 1], [], []>} : vector<32x200xf32>, vector<200x256xf32>, vector<32x256xf32> -> vector<32x256xf32>
    %c0_226 = arith.constant 0 : index
    %c0_227 = arith.constant 0 : index
    %614 = vector.load %arg3[%c0_226, %c0_227] : memref<32x1xf32, #tpu.memory_space<vmem>>, vector<32x1xf32>
    %615 = vector.broadcast %614 : vector<32x1xf32> to vector<32x256xf32>
    %616 = arith.addf %613, %615 : vector<32x256xf32>
    %c0_228 = arith.constant 0 : index
    %c0_229 = arith.constant 0 : index
    %c0_230 = arith.constant 0 : index
    %617 = vector.load %arg4[%c0_228, %c0_229, %c0_230] : memref<1x32x256xf32, #tpu.memory_space<vmem>>, vector<1x32x256xf32>
    %618 = vector.shape_cast %617 : vector<1x32x256xf32> to vector<32x256xf32>
    %619 = vector.shape_cast %616 : vector<32x256xf32> to vector<1x32x256xf32>
    tpu.vector_store %arg4[%c0_228, %c0_229, %c0_230], %619 {strides = array<i32>} : memref<1x32x256xf32, #tpu.memory_space<vmem>>, vector<1x32x256xf32>,
    return
  }
  func.func @transform_0(%arg0: i32) -> (i32, i32, i32, i32) {
    %c0_i32 = arith.constant 0 : i32
    %c0_i32_0 = arith.constant 0 : i32
    %c0_i32_1 = arith.constant 0 : i32
    %c0_i32_2 = arith.constant 0 : i32
    return %arg0, %c0_i32, %c0_i32_0, %c0_i32_1 : i32, i32, i32, i32
  }
  func.func @transform_1(%arg0: i32) -> (i32, i32) {
    %c0_i32 = arith.constant 0 : i32
    %c0_i32_0 = arith.constant 0 : i32
    %c0_i32_1 = arith.constant 0 : i32
    return %c0_i32, %c0_i32_0 : i32, i32
  }
  func.func @transform_2(%arg0: i32) -> (i32, i32) {
    %c0_i32 = arith.constant 0 : i32
    %c0_i32_0 = arith.constant 0 : i32
    %c0_i32_1 = arith.constant 0 : i32
    return %c0_i32, %c0_i32_0 : i32, i32
  }
  func.func @transform_3(%arg0: i32) -> (i32, i32, i32) {
    %c0_i32 = arith.constant 0 : i32
    %c0_i32_0 = arith.constant 0 : i32
    %c0_i32_1 = arith.constant 0 : i32
    return %arg0, %c0_i32, %c0_i32_0 : i32, i32, i32
  }
}

</mosaic_0001>

<bundles_post_ra>
// kernel: tpu_custom_call.1
= control target key start
LH: loop header
LB: loop body
LE: loop exit
PB: predicated region body
PF: predicated region fallthrough
CT: control target
= control target key end

     0   :  { %8 = vsyncpa [#allocation3], 0  ;;  %s1680_s0 = inlined_call_operand.hbm [shape: f32[2,4,8,256], index: 0, kind: input, shape index: {}]   ;;  %s1681_s1 = inlined_call_operand.hbm [shape: f32[32,200], index: 1, kind: input, shape index: {}]   ;;  %s1682_s2 = inlined_call_operand.vmem [shape: f32[32,1], index: 2, kind: input, shape index: {}]   ;;  %s1683_s3 = inlined_call_operand.hbm [shape: f32[2,32,256], index: 3, kind: output, shape index: {}]  }
   0x1   :  { %10 = vsyncpa [#allocation3 + $0x1], 0 }
   0x2   :  { %11 = vsyncpa [#allocation6], 0 }
   0x3   :  { %12 = vsyncpa [#allocation4], 0 }
   0x4   :  { %14 = vsyncpa [#allocation4 + $0x1], 0  ;;  %s1113_s12 = smov 0   ;;  %s1115_s13 = smov 0  }
   0x5   :  { %s1117_s14 = smov 0   ;;  %s1119_s15 = smov 0  }
   0x6 LB: > { %s1134_s16 = sadd.s32 4294967295, %s1075_s15   ;;  %s755_s17 = sadd.s32 4294967294, %s1075_s15   ;;  %s1075_s15 = sphi %s1119_s15, %s1722_s15   ;;  %s1071_s14 = sphi %s1117_s14, %s1721_s14   ;;  %s1067_s13 = sphi %s1115_s13, %s1720_s13   ;;  %s1063_s12 = sphi %s1113_s12, %s1719_s12  }
   0x7   : > { %p40_p0 = scmp.ne.s32.totalorder %s1067_s13, %s1063_s12  ;;  %p1684_p1 = scmp.eq.s32.totalorder %s1134_s16, 0 }
   0x8   : > { %p112_p3 = scmp.eq.s32.totalorder %s755_s17, 1  ;;  %p756_p5 = scmp.ge.s32.totalorder %s1075_s15, 1 }
   0x9   : > { %p1143_p4 = por %p1684_p1, %p40_p0  ;;  %p119_p7 = scmp.lt.s32.totalorder %s1075_s15, 3 }
   0xa   : > { %p1148_p6 = por %p112_p3, %p40_p0  ;;  %s1077_s21 = smov [#allocation5]  }
   0xb   : > { %s1688_s18 = scalar_select %p1143_p4, 1, 0 }
   0xc   : > { %s1689_s19 = scalar_select %p1148_p6, 1, 0 }
   0xd   : > { %p1153_p8 = pnand %p756_p5, %p119_p7  ;;  %s131_s22 = sshll.u32 %s1077_s21, 4  ;;  %s1157_s22 = int_to_ptr.vmem [resolvable:$true] %s131_s22 }
   0xe   : > { %s1169_s24 = sadd.s32 1, %s1075_s15   ;;  %s27_s25 = sadd.s32 1, %s1071_s14 }
   0xf   : > { %s1690_s20 = scalar_select %p1153_p8, 1, 0 }
  0x10   : > { %p883_p9 = pneg %p1153_p8  ;;  %s24_s26 = ssub.s32 %s1075_s15, %s1169_s24 }
  0x11   : > { %s947_s29 = scalar_lea.hbm %s1681_s1, 1024 }
  0x12   : > { %p1164_p11 = pnand %p883_p9, %p1684_p1  ;;  %p948_p12 = scmp.ne.s32.totalorder %s1681_s1, %s947_s29 }
  0x13   : > { %p954_p5 = scmp.lt.u32.totalorder %s947_s29, %s1681_s1 }
  0x14   : > { %p949_p13 = pneg %p1164_p11 }
  0x16   : > { %p950_p0 = pnand %p949_p13, %p948_p12 }
  0x18   : > { %p951_p3 = pneg %p950_p0 }
  0x1a   : > { %p956_p7 = pnand %p954_p5, %p951_p3 }
  0x1c   : > { %959 = shalt.err (!%p956_p7)
}
  0x1d   : > { %s960_s7 = scalar_lea.vmem %s1157_s22, 1024  ;;  %p968_p2 = scmp.lt.s32.totalorder %s1157_s22, %s1157_s22 }
  0x1e   : > { %p961_p9 = scmp.ne.s32.totalorder %s1157_s22, %s960_s7  ;;  %p969_p6 = scmp.lt.s32.totalorder %s960_s7, %s960_s7 }
  0x20   : > { %p963_p10 = pnand %p961_p9, %p949_p13  ;;  %p970_p4 = por %p969_p6, %p968_p2 }
  0x22   : > { %p964_p1 = pneg %p963_p10 }
  0x24   : > { %p971_p8 = pnand %p970_p4, %p964_p1 }
  0x26   : > { %974 = shalt.err (!%p971_p8)
}
  0x27   : > { %s1078_s8 = smov 256   ;;  %s1079_s9 = smov 16  }
  0x28   : > { %886 = dma.hbm_to_vmem [thread:$0]  (!%p1164_p11), %s1681_s1, 1024, %s1157_s22, [#allocation6], %s1078_s8, %s1078_s8, %s1079_s9  }
  0x29   : > { %p25_p1 = scmp.eq.s32.totalorder %s24_s26, 0  ;;  %p34_p2 = scmp.ne.s32.totalorder %s1071_s14, %s1067_s13 }
  0x2a   : > { %p35_p4 = scmp.eq.s32.totalorder %s1075_s15, 0  ;;  %p896_p6 = scmp.lt.s32.totalorder %s1075_s15, 2 }
  0x2b   : > { %s1203_s17 = scalar_select %p25_p1, %s1071_s14, %s27_s25  }
  0x2c   : > { %p36_p8 = por %p35_p4, %p34_p2  ;;  %p1692_p10 = scmp.eq.s32.totalorder %s1134_s16, 1 }
  0x2d   : > { %s148_s23 = sand.u32 1, %s1071_s14   ;;  %s799_s27 = sshll.u32 %s1075_s15, 10 }
  0x2e   : > { %p1207_p12 = por %p1692_p10, %p34_p2  ;;  %s759_s28 = sshll.u32 %s148_s23, 6 }
  0x2f   : > { %s1216_s4 = scalar_lea.hbm %s1680_s0, %s799_s27  ;;  %s152_s22 = scalar_lea.vmem [#allocation2], %s759_s28 }
  0x30   : > { %s159_s25 = sshll.u32 %s152_s22, 4  ;;  %p1218_p11 = pnand %p896_p6, %p36_p8  ;;  %s1222_s25 = int_to_ptr.vmem [resolvable:$true] %s159_s25 }
  0x31   : > { %s1224_s5 = scalar_lea.sflag [#allocation3], %s148_s23  ;;  %s975_s6 = scalar_lea.hbm %s1216_s4, 1024 }
  0x32   : > { %p976_p13 = scmp.ne.s32.totalorder %s1216_s4, %s975_s6  ;;  %p977_p0 = pneg %p1218_p11 }
  0x33   : > { %s980_s11 = scalar_lea.hbm %s1680_s0, 2048  ;;  %p981_p7 = scmp.lt.u32.totalorder %s1216_s4, %s1680_s0 }
  0x34   : > { %p978_p3 = pnand %p977_p0, %p976_p13  ;;  %p982_p9 = scmp.lt.u32.totalorder %s980_s11, %s975_s6 }
  0x35   : > { %p984_p2 = scmp.lt.u32.totalorder %s975_s6, %s1216_s4 }
  0x36   : > { %p979_p5 = pneg %p978_p3  ;;  %p983_p1 = por %p982_p9, %p981_p7 }
  0x38   : > { %p985_p4 = por %p984_p2, %p983_p1 }
  0x3a   : > { %p986_p6 = pnand %p985_p4, %p979_p5 }
  0x3c   : > { %989 = shalt.err (!%p986_p6)
}
  0x3d   : > { %s990_s23 = scalar_lea.vmem %s1222_s25, 1024  ;;  %s1080_s29 = smov [#allocation2]  }
  0x3e   : > { %p991_p8 = scmp.ne.s32.totalorder %s1222_s25, %s990_s23  ;;  %s995_s30 = sshll.u32 %s1080_s29, 4  ;;  %s996_s30 = int_to_ptr.vmem [resolvable:$false] %s995_s30 }
  0x3f   : > { %s997_s22 = scalar_lea.vmem %s996_s30, 2048  ;;  %p998_p3 = scmp.lt.s32.totalorder %s1222_s25, %s996_s30 }
  0x40   : > { %p993_p10 = pnand %p991_p8, %p977_p0  ;;  %p999_p7 = scmp.lt.s32.totalorder %s997_s22, %s990_s23 }
  0x42   : > { %p994_p13 = pneg %p993_p10  ;;  %p1000_p9 = por %p999_p7, %p998_p3 }
  0x44   : > { %p1001_p1 = pnand %p1000_p9, %p994_p13 }
  0x46   : > { %1004 = shalt.err (!%p1001_p1)
}
  0x47   : > { %890 = dma.hbm_to_vmem [thread:$0]  (!%p1218_p11), %s1216_s4, 1024, %s1222_s25, %s1224_s5, %s1078_s8, %s1078_s8, %s1079_s9  }
  0x48   : > { %p1695_p0 = scmp.ne.s32.totalorder %s1690_s20, 0 }
  0x49   : > { %s1258_s6 = sand.u32 (!%p1695_p0), 1, %s1067_s13   ;;  %p1696_p5 = scmp.ne.s32.totalorder (!%p1695_p0), %s1688_s18, 0 }
  0x4a   : > { %171 = sbr.rel (%p1695_p0) target bundleno = 522 (0x20a), region = 32  ;;  %s763_s7 = sshll.u32 (!%p1695_p0), %s1258_s6, 6 }
  0x4b   : > { %s174_s10 = scalar_lea.sflag (!%p1695_p0), [#allocation3], %s1258_s6  ;;  %s177_s26 = scalar_lea.vmem (!%p1695_p0), [#allocation2], %s763_s7 }
  0x51   : > { %1050 = dma.done.wait (%p1696_p5), %s174_s10, 1024  }
  0x52   : > { %1052 = vsyncadd (%p1696_p5), %s174_s10, 4294966272  ;;  %p1697_p11 = scmp.eq.s32.totalorder %s1134_s16, 0 }
  0x54   : > { %1054 = dma.done.wait (%p1697_p11), [#allocation6], 1024   ;;  %p1698_p2 = pmov %p1697_p11 }
  0x55   : > { %v1272_v0 = vld [vmem:[%s177_s26 + $0x10] sm:$0xff]  ;;  %v1274_v1 = vld [vmem:[%s177_s26] sm:$0xff]  ;;  %s1081_s20 = smov 17   ;;  %v1278_v2 = vld [vmem:[%s177_s26 + $0x18] sm:$0xff]  ;;  %s1082_s18 = smov 16   ;;  %v204_v8 = vlaneseq  ;;  %vm1687_vm10 = vcmask 588800  }
  0x56   : > { %1056 = vsyncadd (%p1698_p2), [#allocation6], 4294966272  ;;  %253 = vrot.lane.b32.xlu1 %v1272_v0, %s1081_s20  ;;  %222 = vrot.lane.b32.xlu0 %v1274_v1, %s1081_s20  ;;  %v1280_v3 = vld [vmem:[%s177_s26 + $0x8] sm:$0xff]  ;;  %s1083_s8 = smov 15   ;;  %v1296_v5 = vld [vmem:[%s177_s26 + $0x20] sm:$0xff]  ;;  %s1084_s9 = smov 1  }
  0x57   : > { %v1294_v4 = vld [vmem:[%s177_s26 + $0x28] sm:$0xff]  ;;  %v1300_v6 = vld [vmem:[%s177_s26 + $0x38] sm:$0xff]  ;;  %v1302_v7 = vld [vmem:[%s177_s26 + $0x30] sm:$0xff]  ;;  %v1314_v9 = vand.u32 127, %v204_v8  ;;  %s1085_s4 = smov 127   ;;  %s1086_s25 = smov 113  }
  0x58   : > { %s1087_s5 = smov 112   ;;  %v517_v23 = vld [vmem:[#allocation5 + $0x8] sm:$0xff]  ;;  %v1088_v25 = vmov 0   ;;  %s1089_s11 = smov 111   ;;  %v524_v27 = vld [vmem:[%s1682_s2] sm:$0xff]  ;;  %v526_v28 = vld [vmem:[%s1682_s2 + $0x10] sm:$0xff] }
  0x59   : > { %v1319_v10 = vadd.s32 128, %v1314_v9  ;;  %v209_v11 = vand.u32 15, %v1314_v9  ;;  %v1328_v13 = vshra.s32 %v1314_v9, 4  ;;  %v521_v24 = vld [vmem:[#allocation5 + $0x28] sm:$0xff]  ;;  %790 = vmatprep.mubr.msk.f32.mxu0 %vm1687_vm10, %v517_v23  ;;  %946 = vset.pattern.permute.xlu1 %v1088_v25  ;;  %v527_v29 = vld [vmem:[%s1682_s2 + $0x18] sm:$0xff]  ;;  %v1090_v36 = vmov 0.0  }
  0x5a   : > { %255 = vrot.lane.b32.xlu1 %v1278_v2, %s1081_s20  ;;  %224 = vrot.lane.b32.xlu0 %v1280_v3, %s1081_s20  ;;  %v525_v26 = vld [vmem:[%s1682_s2 + $0x8] sm:$0xff]  ;;  %v516_v19 = vld [vmem:[#allocation5] sm:$0xff] }
  0x5b   : > { %v210_v12 = vand.u32 15, %v1319_v10  ;;  %v1331_v14 = vshra.s32 %v1319_v10, 4  ;;  %v1335_v15 = vadd.s32 4294967295, %v209_v11  ;;  %v448_v16 = vadd.s32 1, %v1328_v13  ;;  %792 = vmatprep.mubr.msk.f32.mxu1 %vm1687_vm10, %v521_v24  ;;  %945 = vset.pattern.permute.xlu0 %v1088_v25 }
  0x5c   : > { %v229_v30 = vadd.s32 4294967295, %v1328_v13  ;;  %v1441_v53 = vadd.s32 1, %v209_v11 }
  0x5d   : > { %v449_v17 = vadd.s32 1, %v1331_v14  ;;  %v1341_v18 = vadd.s32 4294967295, %v210_v12  ;;  %vm450_vm0 = vcmp.ge.s32.totalorder %v448_v16, 0  ;;  %vm452_vm2 = vcmp.lt.s32.totalorder %v448_v16, 16 }
  0x5e   : > { %263 = vrot.lane.b32.xlu1 %v1280_v3, %s1082_s18  ;;  %261 = vrot.lane.b32.xlu0 %v1274_v1, %s1082_s18  ;;  %vm1345_vm4 = vmand %vm450_vm0, %vm452_vm2  ;;  %vm239_vm5 = vcmp.ge.s32.totalorder %v1335_v15, 0  ;;  %v230_v31 = vadd.s32 4294967295, %v1331_v14  ;;  %vm231_vm11 = vcmp.ge.s32.totalorder %v229_v30, 0  ;;  %vm233_vm12 = vcmp.lt.s32.totalorder %v229_v30, 16 }
  0x5f   : > { %vm451_vm1 = vcmp.ge.s32.totalorder %v449_v17, 0  ;;  %vm453_vm3 = vcmp.lt.s32.totalorder %v449_v17, 16  ;;  %vm240_vm7 = vcmp.ge.s32.totalorder %v1341_v18, 0  ;;  %vm1359_vm8 = vmand %vm1345_vm4, %vm239_vm5  ;;  %v1445_v54 = vadd.s32 1, %v210_v12 }
  0x60   : > { %vm1350_vm6 = vmand %vm451_vm1, %vm453_vm3  ;;  %vm232_vm13 = vcmp.ge.s32.totalorder %v230_v31, 0  ;;  %vm234_vm14 = vcmp.lt.s32.totalorder %v230_v31, 16  ;;  %vm226_vm3 = vcmp.lt.s32.totalorder %v1314_v9, 17  ;;  %v786_v22 = vsel %vm1345_vm4, 1.0, %v1090_v36 }
  0x61   : > { %vm1369_vm9 = vmand %vm1350_vm6, %vm240_vm7 }
  0x62   : > { %284 = vrot.lane.b32.xlu1 %v1278_v2, %s1082_s18  ;;  %282 = vrot.lane.b32.xlu0 %v1272_v0, %s1082_s18  ;;  %vm1403_vm15 = vmand %vm231_vm11, %vm233_vm12  ;;  %vm265_vm11 = vcmp.lt.s32.totalorder %v1314_v9, 16  ;;  %vm303_vm12 = vcmp.lt.s32.totalorder %v1441_v53, 16 }
  0x63   : > { %vm1407_vm0 = vmand %vm232_vm13, %vm234_vm14  ;;  %v1450_v55 = vsel %vm1403_vm15, 1.0, %v1090_v36  ;;  %vm304_vm13 = vcmp.lt.s32.totalorder %v1445_v54, 16 }
  0x64   : > { %vm241_vm1 = vmand %vm1403_vm15, %vm239_vm5  ;;  %v1455_v56 = vsel %vm1407_vm0, 1.0, %v1090_v36 }
  0x65   : > { %vm242_vm2 = vmand %vm1407_vm0, %vm240_vm7  ;;  %v1421_v37 = vsel %vm241_vm1, 1.0, %v1090_v36  ;;  %vm294_vm1 = vcmp.lt.s32.totalorder %v1314_v9, 15 }
  0x66   : > { %292 = vrot.lane.b32.xlu1 %v1280_v3, %s1083_s8  ;;  %290 = vrot.lane.b32.xlu0 %v1274_v1, %s1083_s8  ;;  %v1424_v38 = vsel %vm242_vm2, 1.0, %v1090_v36  ;;  %vm305_vm14 = vmand %vm1403_vm15, %vm303_vm12  ;;  %vm360_vm15 = vcmp.ge.s32.totalorder %v1328_v13, 0 }
  0x67   : > { %vm306_vm2 = vmand %vm1407_vm0, %vm304_vm13  ;;  %v776_v24 = vsel %vm305_vm14, 1.0, %v1090_v36  ;;  %vm362_vm0 = vcmp.lt.s32.totalorder %v1328_v13, 16  ;;  %vm363_vm14 = vcmp.lt.s32.totalorder %v1331_v14, 16 }
  0x68   : > { %v777_v25 = vsel %vm306_vm2, 1.0, %v1090_v36  ;;  %vm1512_vm2 = vmand %vm360_vm15, %vm362_vm0  ;;  %vm357_vm15 = vcmp.lt.s32.totalorder %v1314_v9, 1 }
  0x6a   : > { %315 = vrot.lane.b32.xlu1 %v1294_v4, %s1081_s20  ;;  %313 = vrot.lane.b32.xlu0 %v1296_v5, %s1081_s20 }
  0x6e   : > { %323 = vrot.lane.b32.xlu1 %v1300_v6, %s1081_s20  ;;  %321 = vrot.lane.b32.xlu0 %v1302_v7, %s1081_s20  ;;  %s203_s20 = scalar_lea.vmem [#allocation7], %s763_s7 }
  0x72   : > { %331 = vrot.lane.b32.xlu1 %v1294_v4, %s1082_s18  ;;  %329 = vrot.lane.b32.xlu0 %v1296_v5, %s1082_s18 }
  0x76   : > { %339 = vrot.lane.b32.xlu1 %v1300_v6, %s1082_s18  ;;  %337 = vrot.lane.b32.xlu0 %v1302_v7, %s1082_s18 }
  0x7a   : > { %347 = vrot.lane.b32.xlu1 %v1294_v4, %s1083_s8  ;;  %345 = vrot.lane.b32.xlu0 %v1296_v5, %s1083_s8  ;;  %s672_s8 = sshll.u32 %s203_s20, 4  ;;  %s1630_s8 = int_to_ptr.vmem [resolvable:$true] %s672_s8 }
  0x7e   : > { %355 = vrot.lane.b32.xlu1 %v1280_v3, %s1084_s9  ;;  %353 = vrot.lane.b32.xlu0 %v1274_v1, %s1084_s9 }
  0x82   : > { %378 = vrot.lane.b32.xlu1 %v1278_v2, %s1084_s9  ;;  %376 = vrot.lane.b32.xlu0 %v1272_v0, %s1084_s9 }
  0x86   : > { %398 = vrot.lane.b32.xlu1 %v1280_v3, %s1085_s4  ;;  %396 = vrot.lane.b32.xlu0 %v1274_v1, %s1085_s4 }
  0x8a   : > { %415 = vrot.lane.b32.xlu1 %v1294_v4, %s1084_s9  ;;  %413 = vrot.lane.b32.xlu0 %v1296_v5, %s1084_s9 }
  0x8e   : > { %423 = vrot.lane.b32.xlu1 %v1300_v6, %s1084_s9  ;;  %421 = vrot.lane.b32.xlu0 %v1302_v7, %s1084_s9  ;;  %s800_s9 = sshll.u32 %s1134_s16, 10 }
  0x8f   : > { %s1635_s16 = scalar_lea.hbm %s1683_s3, %s800_s9 }
  0x92   : > { %435 = vrot.lane.b32.xlu1 %v1294_v4, %s1085_s4  ;;  %433 = vrot.lane.b32.xlu0 %v1296_v5, %s1085_s4 }
  0x96   : > { %443 = vrot.lane.b32.xlu1 %v1280_v3, %s1086_s25  ;;  %441 = vrot.lane.b32.xlu0 %v1274_v1, %s1086_s25 }
  0x9a   : > { %468 = vrot.lane.b32.xlu1 %v1278_v2, %s1086_s25  ;;  %466 = vrot.lane.b32.xlu0 %v1272_v0, %s1086_s25  ;;  %s659_s25 = scalar_lea.sflag [#allocation4], %s1258_s6 }
  0x9e   : > { %476 = vrot.lane.b32.xlu1 %v1280_v3, %s1087_s5  ;;  %474 = vrot.lane.b32.xlu0 %v1274_v1, %s1087_s5 }
  0xa2   : > { %493 = vrot.lane.b32.xlu1 %v1278_v2, %s1087_s5  ;;  %491 = vrot.lane.b32.xlu0 %v1272_v0, %s1087_s5  ;;  %s1005_s5 = scalar_lea.vmem %s1630_s8, 1024 }
  0xa3   : > { %p1006_p4 = scmp.ne.s32.totalorder %s1630_s8, %s1005_s5 }
  0xa5   : > { %p1007_p6 = pnand %p1006_p4, %p1207_p12 }
  0xa6   : > { %501 = vrot.lane.b32.xlu1 %v1280_v3, %s1089_s11  ;;  %499 = vrot.lane.b32.xlu0 %v1274_v1, %s1089_s11  ;;  %s1091_s11 = smov [#allocation7]  }
  0xa7   : > { %p1008_p8 = pneg %p1007_p6  ;;  %s1009_s27 = sshll.u32 %s1091_s11, 4  ;;  %s1010_s27 = int_to_ptr.vmem [resolvable:$false] %s1009_s27 }
  0xa8   : > { %s1011_s28 = scalar_lea.vmem %s1010_s27, 2048  ;;  %p1012_p10 = scmp.lt.s32.totalorder %s1630_s8, %s1010_s27 }
  0xa9   : > { %p1013_p13 = scmp.lt.s32.totalorder %s1011_s28, %s1005_s5 }
  0xaa   : > { %535 = vperm.xlu1 %946, %v525_v26   ;;  %530 = vperm.xlu0 %945, %v524_v27  }
  0xab   : > { %p1014_p3 = por %p1013_p13, %p1012_p10 }
  0xad   : > { %p1015_p7 = pnand %p1014_p3, %p1008_p8 }
  0xae   : > { %540 = vperm.xlu1 %946, %v526_v28   ;;  %545 = vperm.xlu0 %945, %v527_v29  }
  0xc8   : > { %v254_v34 = vpop.permute.xlu1 %253  ;;  %v223_v35 = vpop.permute.xlu0 %222 }
  0xcc   : > { %v256_v39 = vpop.permute.xlu1 %255  ;;  %v225_v40 = vpop.permute.xlu0 %224 }
  0xcd   : > { %v257_v41 = vsel %vm226_vm3, %v254_v34, %v256_v39  ;;  %v258_v42 = vsel %vm226_vm3, %v256_v39, %v254_v34  ;;  %v227_v43 = vsel %vm226_vm3, %v223_v35, %v225_v40  ;;  %v228_v44 = vsel %vm226_vm3, %v225_v40, %v223_v35 }
  0xce   : > { %v259_v45 = vmul.f32 %v1421_v37, %v258_v42  ;;  %v260_v46 = vmul.f32 %v1424_v38, %v257_v41  ;;  %v251_v47 = vmul.f32 %v1421_v37, %v228_v44  ;;  %v252_v48 = vmul.f32 %v1424_v38, %v227_v43 }
  0xd0   : > { %v264_v49 = vpop.permute.xlu1 %263  ;;  %v262_v50 = vpop.permute.xlu0 %261  ;;  %v801_v51 = vpack.c.bf16 %v260_v46, %v252_v48  ;;  %v803_v52 = vpack.c.bf16 %v259_v45, %v251_v47 }
  0xd1   : > { %v266_v57 = vsel %vm265_vm11, %v262_v50, %v264_v49  ;;  %v267_v58 = vsel %vm265_vm11, %v264_v49, %v262_v50 }
  0xd2   : > { %802 = vmatprep.subr.bf16.mxu0 %v801_v51  ;;  %849 = vmatprep.subr.bf16.mxu1 %v801_v51  ;;  %v280_v63 = vmul.f32 %v1450_v55, %v267_v58  ;;  %v281_v8 = vmul.f32 %v1455_v56, %v266_v57 }
  0xd3   : > { %804 = vmatpush1.bf16.msra.mxu0 %v803_v52  ;;  %862 = vmatpush1.bf16.msra.mxu1 %v803_v52 }
  0xd4   : > { %v285_v59 = vpop.permute.xlu1 %284  ;;  %v283_v60 = vpop.permute.xlu0 %282 }
  0xd5   : > { %v286_v61 = vsel %vm265_vm11, %v283_v60, %v285_v59  ;;  %v287_v62 = vsel %vm265_vm11, %v285_v59, %v283_v60 }
  0xd6   : > { %v288_v10 = vmul.f32 %v1450_v55, %v287_v62  ;;  %v289_v11 = vmul.f32 %v1455_v56, %v286_v61 }
  0xd8   : > { %v293_v12 = vpop.permute.xlu1 %292  ;;  %v291_v16 = vpop.permute.xlu0 %290  ;;  %v805_v17 = vpack.c.bf16 %v289_v11, %v281_v8  ;;  %v807_v23 = vpack.c.bf16 %v288_v10, %v280_v63 }
  0xd9   : > { %v295_v26 = vsel %vm294_vm1, %v291_v16, %v293_v12  ;;  %v296_v27 = vsel %vm294_vm1, %v293_v12, %v291_v16 }
  0xda   : > { %806 = vmatprep.subr.bf16.mxu0 %v805_v17  ;;  %850 = vmatprep.subr.bf16.mxu1 %v805_v17  ;;  %v311_v32 = vmul.f32 %v776_v24, %v296_v27  ;;  %v312_v33 = vmul.f32 %v777_v25, %v295_v26 }
  0xdb   : > { %808 = vmatpush1.bf16.msra.mxu0 %v807_v23  ;;  %863 = vmatpush1.bf16.msra.mxu1 %v807_v23 }
  0xdc   : > { %v316_v28 = vpop.permute.xlu1 %315  ;;  %v314_v29 = vpop.permute.xlu0 %313 }
  0xdd   : > { %v317_v30 = vsel %vm226_vm3, %v314_v29, %v316_v28  ;;  %v318_v31 = vsel %vm226_vm3, %v316_v28, %v314_v29 }
  0xde   : > { %v319_v34 = vmul.f32 %v1421_v37, %v318_v31  ;;  %v320_v35 = vmul.f32 %v1424_v38, %v317_v30  ;;  %v780_v31 = vsel %vm1512_vm2, 1.0, %v1090_v36 }
  0xe0   : > { %v324_v39 = vpop.permute.xlu1 %323  ;;  %v322_v40 = vpop.permute.xlu0 %321  ;;  %v809_v41 = vpack.c.bf16 %v320_v35, %v312_v33  ;;  %v811_v42 = vpack.c.bf16 %v319_v34, %v311_v32 }
  0xe1   : > { %v325_v43 = vsel %vm226_vm3, %v322_v40, %v324_v39  ;;  %v326_v44 = vsel %vm226_vm3, %v324_v39, %v322_v40  ;;  %vm361_vm3 = vcmp.ge.s32.totalorder %v1331_v14, 0 }
  0xe2   : > { %810 = vmatprep.subr.bf16.mxu0 %v809_v41  ;;  %851 = vmatprep.subr.bf16.mxu1 %v809_v41  ;;  %v327_v49 = vmul.f32 %v1421_v37, %v326_v44  ;;  %v328_v50 = vmul.f32 %v1424_v38, %v325_v43  ;;  %vm1520_vm10 = vmand %vm361_vm3, %vm363_vm14  ;;  %vm478_vm3 = vcmp.lt.s32.totalorder %v1314_v9, 112 }
  0xe3   : > { %812 = vmatpush1.bf16.msra.mxu0 %v811_v42  ;;  %864 = vmatpush1.bf16.msra.mxu1 %v811_v42  ;;  %vm406_vm0 = vmand %vm1520_vm10, %vm304_vm13 }
  0xe4   : > { %v332_v45 = vpop.permute.xlu1 %331  ;;  %v330_v46 = vpop.permute.xlu0 %329  ;;  %vm508_vm14 = vmand %vm1345_vm4, %vm303_vm12  ;;  %vm1715_vm4 = vcmask 588800  }
  0xe5   : > { %v333_v47 = vsel %vm265_vm11, %v330_v46, %v332_v45  ;;  %v334_v48 = vsel %vm265_vm11, %v332_v45, %v330_v46 }
  0xe6   : > { %v335_v51 = vmul.f32 %v1450_v55, %v334_v48  ;;  %v336_v52 = vmul.f32 %v1455_v56, %v333_v47 }
  0xe8   : > { %v340_v57 = vpop.permute.xlu1 %339  ;;  %v338_v58 = vpop.permute.xlu0 %337  ;;  %v813_v59 = vpack.c.bf16 %v336_v52, %v328_v50  ;;  %v815_v60 = vpack.c.bf16 %v335_v51, %v327_v49 }
  0xe9   : > { %v341_v37 = vsel %vm265_vm11, %v338_v58, %v340_v57  ;;  %v342_v38 = vsel %vm265_vm11, %v340_v57, %v338_v58  ;;  %vm366_vm11 = vmand %vm1512_vm2, %vm239_vm5 }
  0xea   : > { %814 = vmatprep.subr.bf16.mxu0 %v813_v59  ;;  %852 = vmatprep.subr.bf16.mxu1 %v813_v59  ;;  %v343_v10 = vmul.f32 %v1450_v55, %v342_v38  ;;  %v344_v11 = vmul.f32 %v1455_v56, %v341_v37  ;;  %v1538_v56 = vsel %vm1520_vm10, 1.0, %v1090_v36  ;;  %v778_v15 = vsel %vm366_vm11, 1.0, %v1090_v36  ;;  %vm405_vm5 = vmand %vm1512_vm2, %vm303_vm12 }
  0xeb   : > { %816 = vmatpush1.bf16.msra.mxu0 %v815_v60  ;;  %865 = vmatpush1.bf16.msra.mxu1 %v815_v60  ;;  %v393_v29 = vmul.f32 %v1538_v56, %v1280_v3  ;;  %v395_v30 = vmul.f32 %v1538_v56, %v1278_v2  ;;  %v392_v2 = vmul.f32 %v780_v31, %v1274_v1  ;;  %v782_v46 = vsel %vm405_vm5, 1.0, %v1090_v36 }
  0xec   : > { %v348_v61 = vpop.permute.xlu1 %347  ;;  %v346_v62 = vpop.permute.xlu0 %345  ;;  %v394_v3 = vmul.f32 %v780_v31, %v1272_v0  ;;  %v783_v1 = vsel %vm406_vm0, 1.0, %v1090_v36  ;;  %v430_v63 = vmul.f32 %v1538_v56, %v1294_v4  ;;  %v432_v4 = vmul.f32 %v1538_v56, %v1300_v6 }
  0xed   : > { %v349_v13 = vsel %vm294_vm1, %v346_v62, %v348_v61  ;;  %v350_v14 = vsel %vm294_vm1, %v348_v61, %v346_v62  ;;  %vm367_vm1 = vmand %vm1520_vm10, %vm240_vm7  ;;  %vm400_vm7 = vcmp.lt.s32.totalorder %v1314_v9, 127  ;;  %v825_v45 = vpack.c.bf16 %v395_v30, %v393_v29 }
  0xee   : > { %v351_v12 = vmul.f32 %v776_v24, %v350_v14  ;;  %v352_v16 = vmul.f32 %v777_v25, %v349_v13  ;;  %v779_v24 = vsel %vm367_vm1, 1.0, %v1090_v36  ;;  %v827_v48 = vpack.c.bf16 %v394_v3, %v392_v2 }
  0xef   : > { %v429_v13 = vmul.f32 %v780_v31, %v1296_v5  ;;  %v431_v5 = vmul.f32 %v780_v31, %v1302_v7  ;;  %vm445_vm10 = vcmp.lt.s32.totalorder %v1314_v9, 113  ;;  %v784_v7 = vsel %vm1359_vm8, 1.0, %v1090_v36  ;;  %vm509_vm8 = vmand %vm1350_vm6, %vm304_vm13 }
  0xf0   : > { %v356_v17 = vpop.permute.xlu1 %355  ;;  %v354_v23 = vpop.permute.xlu0 %353  ;;  %v817_v26 = vpack.c.bf16 %v352_v16, %v344_v11  ;;  %v819_v55 = vpack.c.bf16 %v351_v12, %v343_v10  ;;  %v785_v56 = vsel %vm1369_vm9, 1.0, %v1090_v36  ;;  %vm503_vm9 = vcmp.lt.s32.totalorder %v1314_v9, 111 }
  0xf1   : > { %v358_v18 = vsel %vm357_vm15, %v354_v23, %v356_v17  ;;  %v359_v25 = vsel %vm357_vm15, %v356_v17, %v354_v23  ;;  %v789_v20 = vsel %vm509_vm8, 1.0, %v1090_v36 }
  0xf2   : > { %818 = vmatprep.subr.bf16.mxu0 %v817_v26  ;;  %853 = vmatprep.subr.bf16.mxu1 %v817_v26  ;;  %v374_v34 = vmul.f32 %v778_v15, %v359_v25  ;;  %v375_v35 = vmul.f32 %v779_v24, %v358_v18 }
  0xf3   : > { %820 = vmatpush1.bf16.msra.mxu0 %v819_v55  ;;  %866 = vmatpush1.bf16.msra.mxu1 %v819_v55 }
  0xf4   : > { %v379_v27 = vpop.permute.xlu1 %378  ;;  %v377_v28 = vpop.permute.xlu0 %376 }
  0xf5   : > { %v380_v32 = vsel %vm357_vm15, %v377_v28, %v379_v27  ;;  %v381_v33 = vsel %vm357_vm15, %v379_v27, %v377_v28 }
  0xf6   : > { %v382_v39 = vmul.f32 %v778_v15, %v381_v33  ;;  %v383_v40 = vmul.f32 %v779_v24, %v380_v32 }
  0xf8   : > { %v399_v41 = vpop.permute.xlu1 %398  ;;  %v397_v42 = vpop.permute.xlu0 %396  ;;  %v821_v43 = vpack.c.bf16 %v383_v40, %v375_v35  ;;  %v823_v44 = vpack.c.bf16 %v382_v39, %v374_v34 }
  0xf9   : > { %v401_v0 = vsel %vm400_vm7, %v397_v42, %v399_v41  ;;  %v402_v47 = vsel %vm400_vm7, %v399_v41, %v397_v42  ;;  %v787_v42 = vsel %vm1350_vm6, 1.0, %v1090_v36  ;;  %vm1716_vm6 = vmmov %vm1715_vm4 }
  0xfa   : > { %822 = vmatprep.subr.bf16.mxu0 %v821_v43  ;;  %854 = vmatprep.subr.bf16.mxu1 %v821_v43  ;;  %v411_v57 = vmul.f32 %v782_v46, %v401_v0  ;;  %v412_v58 = vmul.f32 %v783_v1, %v402_v47 }
  0xfb   : > { %824 = vmatpush1.bf16.msra.mxu0 %v823_v44  ;;  %867 = vmatpush1.bf16.msra.mxu1 %v823_v44 }
  0xfc   : > { %v416_v49 = vpop.permute.xlu1 %415  ;;  %v414_v50 = vpop.permute.xlu0 %413  ;;  %826 = vmatprep.subr.bf16.mxu0 %v825_v45  ;;  %855 = vmatprep.subr.bf16.mxu1 %v825_v45 }
  0xfd   : > { %v417_v51 = vsel %vm357_vm15, %v414_v50, %v416_v49  ;;  %v418_v52 = vsel %vm357_vm15, %v416_v49, %v414_v50 }
  0xfe   : > { %v419_v59 = vmul.f32 %v778_v15, %v418_v52  ;;  %v420_v60 = vmul.f32 %v779_v24, %v417_v51  ;;  %v788_v51 = vsel %vm508_vm14, 1.0, %v1090_v36  ;;  %v518_v36 = vld [vmem:[#allocation5 + $0x10] sm:$0xff] }
  0xff   : > { %828 = vmatpush1.bf16.msra.mxu0 %v827_v48  ;;  %868 = vmatpush1.bf16.msra.mxu1 %v827_v48 }
 0x100   : > { %v424_v37 = vpop.permute.xlu1 %423  ;;  %v422_v38 = vpop.permute.xlu0 %421  ;;  %v829_v61 = vpack.c.bf16 %v420_v60, %v412_v58  ;;  %v831_v62 = vpack.c.bf16 %v419_v59, %v411_v57 }
 0x101   : > { %v425_v14 = vsel %vm357_vm15, %v422_v38, %v424_v37  ;;  %v426_v8 = vsel %vm357_vm15, %v424_v37, %v422_v38  ;;  %v520_v37 = vld [vmem:[#allocation5 + $0x20] sm:$0xff]  ;;  %v519_v38 = vld [vmem:[#allocation5 + $0x18] sm:$0xff] }
 0x102   : > { %v427_v10 = vmul.f32 %v778_v15, %v426_v8  ;;  %v428_v11 = vmul.f32 %v779_v24, %v425_v14  ;;  %830 = vmatprep.subr.bf16.mxu0 %v829_v61  ;;  %856 = vmatprep.subr.bf16.mxu1 %v829_v61  ;;  %v523_v61 = vld [vmem:[#allocation5 + $0x38] sm:$0xff] }
 0x103   : > { %832 = vmatpush1.bf16.msra.mxu0 %v831_v62  ;;  %869 = vmatpush1.bf16.msra.mxu1 %v831_v62  ;;  %v522_v62 = vld [vmem:[#allocation5 + $0x30] sm:$0xff] }
 0x104   : > { %v436_v12 = vpop.permute.xlu1 %435  ;;  %v434_v16 = vpop.permute.xlu0 %433  ;;  %v833_v17 = vpack.c.bf16 %v430_v63, %v428_v11  ;;  %v835_v23 = vpack.c.bf16 %v429_v13, %v427_v10 }
 0x105   : > { %v437_v26 = vsel %vm400_vm7, %v434_v16, %v436_v12  ;;  %v438_v55 = vsel %vm400_vm7, %v436_v12, %v434_v16 }
 0x106   : > { %v439_v15 = vmul.f32 %v782_v46, %v437_v26  ;;  %v440_v24 = vmul.f32 %v783_v1, %v438_v55  ;;  %834 = vmatprep.subr.bf16.mxu0 %v833_v17  ;;  %857 = vmatprep.subr.bf16.mxu1 %v833_v17 }
 0x107   : > { %836 = vmatpush1.bf16.msra.mxu0 %v835_v23  ;;  %870 = vmatpush1.bf16.msra.mxu1 %v835_v23 }
 0x108   : > { %v444_v18 = vpop.permute.xlu1 %443  ;;  %v442_v25 = vpop.permute.xlu0 %441  ;;  %v837_v27 = vpack.c.bf16 %v440_v24, %v432_v4  ;;  %v839_v6 = vpack.c.bf16 %v439_v15, %v431_v5 }
 0x109   : > { %v446_v28 = vsel %vm445_vm10, %v442_v25, %v444_v18  ;;  %v447_v29 = vsel %vm445_vm10, %v444_v18, %v442_v25 }
 0x10a   : > { %838 = vmatprep.subr.bf16.mxu0 %v837_v27  ;;  %858 = vmatprep.subr.bf16.mxu1 %v837_v27  ;;  %v464_v34 = vmul.f32 %v784_v7, %v446_v28  ;;  %v465_v35 = vmul.f32 %v785_v56, %v447_v29 }
 0x10b   : > { %840 = vmatpush1.bf16.msra.mxu0 %v839_v6  ;;  %871 = vmatpush1.bf16.msra.mxu1 %v839_v6 }
 0x10c   : > { %v469_v30 = vpop.permute.xlu1 %468  ;;  %v467_v31 = vpop.permute.xlu0 %466 }
 0x10d   : > { %v470_v32 = vsel %vm445_vm10, %v467_v31, %v469_v30  ;;  %v471_v33 = vsel %vm445_vm10, %v469_v30, %v467_v31 }
 0x10e   : > { %v472_v39 = vmul.f32 %v784_v7, %v470_v32  ;;  %v473_v40 = vmul.f32 %v785_v56, %v471_v33 }
 0x110   : > { %v477_v2 = vpop.permute.xlu1 %476  ;;  %v475_v21 = vpop.permute.xlu0 %474  ;;  %v841_v3 = vpack.c.bf16 %v473_v40, %v465_v35  ;;  %v843_v41 = vpack.c.bf16 %v472_v39, %v464_v34 }
 0x111   : > { %v479_v43 = vsel %vm478_vm3, %v475_v21, %v477_v2  ;;  %v480_v44 = vsel %vm478_vm3, %v477_v2, %v475_v21 }
 0x112   : > { %842 = vmatprep.subr.bf16.mxu0 %v841_v3  ;;  %859 = vmatprep.subr.bf16.mxu1 %v841_v3  ;;  %v489_v47 = vmul.f32 %v786_v22, %v479_v43  ;;  %v490_v48 = vmul.f32 %v787_v42, %v480_v44 }
 0x113   : > { %844 = vmatpush1.bf16.msra.mxu0 %v843_v41  ;;  %872 = vmatpush1.bf16.msra.mxu1 %v843_v41 }
 0x114   : > { %v494_v45 = vpop.permute.xlu1 %493  ;;  %v492_v46 = vpop.permute.xlu0 %491 }
 0x115   : > { %v495_v1 = vsel %vm478_vm3, %v492_v46, %v494_v45  ;;  %v496_v0 = vsel %vm478_vm3, %v494_v45, %v492_v46 }
 0x116   : > { %v497_v49 = vmul.f32 %v786_v22, %v495_v1  ;;  %v498_v54 = vmul.f32 %v787_v42, %v496_v0 }
 0x118   : > { %v502_v50 = vpop.permute.xlu1 %501  ;;  %v500_v52 = vpop.permute.xlu0 %499  ;;  %v845_v57 = vpack.c.bf16 %v498_v54, %v490_v48  ;;  %v847_v58 = vpack.c.bf16 %v497_v49, %v489_v47 }
 0x119   : > { %v504_v59 = vsel %vm503_vm9, %v500_v52, %v502_v50  ;;  %v505_v60 = vsel %vm503_vm9, %v502_v50, %v500_v52 }
 0x11a   : > { %v515_v9 = vmul.f32 %v789_v20, %v505_v60  ;;  %846 = vmatprep.subr.bf16.mxu0 %v845_v57  ;;  %860 = vmatprep.subr.bf16.mxu1 %v845_v57  ;;  %v514_v53 = vmul.f32 %v788_v51, %v504_v59 }
 0x11b   : > { %848 = vmatpush1.bf16.msra.mxu0 %v847_v58  ;;  %873 = vmatpush1.bf16.msra.mxu1 %v847_v58 }
 0x11c   : > { %609 = vmatprep.subr.mxu0 %v515_v9  ;;  %861 = vmatprep.subr.mxu1 %v515_v9 }
 0x11f   : > { %610 = vmatpush1.msra.mxu0 %v514_v53  ;;  %874 = vmatpush1.msra.mxu1 %v514_v53 }
 0x120   : > { %626 = vmatmul.mubr.f32.vlgmr.msra.gmra.mrb[0].mxu0 %v516_v19  ;;  %638 = vmatmul.mubr.f32.vlgmr.msra.gmra.mrb[0].mxu1 %v520_v37 }
 0x121   : > { %791 = vmatprep.mubr.msk.f32.mxu0 %vm1715_vm4, %v519_v38  ;;  %793 = vmatprep.mubr.msk.f32.mxu1 %vm1716_vm6, %v523_v61 }
 0x124   : > { %632 = vmatmul.mubr.f32.gmra.mrb[2].mxu0 %v518_v36  ;;  %644 = vmatmul.mubr.f32.gmra.mrb[2].mxu1 %v522_v62 }
 0x129   : > { %v536_v63 = vpop.permute.xlu1 %535  ;;  %v531_v13 = vpop.permute.xlu0 %530 }
 0x12d   : > { %v541_v14 = vpop.permute.xlu1 %540  ;;  %v546_v5 = vpop.permute.xlu0 %545 }
 0x1f3   : > { %v627_v8 = vpop.f32.mrb[0].mxu0  ;;  %v639_v10 = vpop.f32.mrb[0].mxu1 }
 0x1f4   : > { %v628_v11 = vadd.f32 %v627_v8, %v531_v13  ;;  %v640_v12 = vadd.f32 %v639_v10, %v541_v14  ;;  %v629_v16 = vpop.f32.mrb[1].mxu0  ;;  %v641_v17 = vpop.f32.mrb[1].mxu1 }
 0x1f5   : > { %v630_v23 = vadd.f32 %v629_v16, %v531_v13  ;;  %v642_v4 = vadd.f32 %v641_v17, %v541_v14 }
 0x1f6   : > { %650 = vst [vmem:[%s203_s20] sm:$0xff] %v628_v11  ;;  %654 = vst [vmem:[%s203_s20 + $0x20] sm:$0xff] %v640_v12 }
 0x1f7   : > { %651 = vst [vmem:[%s203_s20 + $0x8] sm:$0xff] %v630_v23  ;;  %655 = vst [vmem:[%s203_s20 + $0x28] sm:$0xff] %v642_v4  ;;  %v633_v26 = vpop.f32.mrb[2].mxu0  ;;  %v645_v55 = vpop.f32.mrb[2].mxu1 }
 0x1f8   : > { %v634_v15 = vadd.f32 %v633_v26, %v536_v63  ;;  %v646_v24 = vadd.f32 %v645_v55, %v546_v5  ;;  %v635_v18 = vpop.f32.mrb[3].mxu0  ;;  %v647_v25 = vpop.f32.mrb[3].mxu1 }
 0x1f9   : > { %v636_v27 = vadd.f32 %v635_v18, %v536_v63  ;;  %v648_v6 = vadd.f32 %v647_v25, %v546_v5 }
 0x1fa   : > { %652 = vst [vmem:[%s203_s20 + $0x10] sm:$0xff] %v634_v15  ;;  %656 = vst [vmem:[%s203_s20 + $0x30] sm:$0xff] %v646_v24 }
 0x1fb   : > { %653 = vst [vmem:[%s203_s20 + $0x18] sm:$0xff] %v636_v27  ;;  %657 = vst [vmem:[%s203_s20 + $0x38] sm:$0xff] %v648_v6 }
 0x1fc   : > { %1018 = shalt.err (!%p1015_p7)
}
 0x1fd   : > { %s1019_s23 = scalar_lea.hbm %s1635_s16, 1024  ;;  %s1023_s22 = scalar_lea.hbm %s1683_s3, 2048 }
 0x1fe   : > { %p1020_p9 = scmp.ne.s32.totalorder %s1635_s16, %s1019_s23  ;;  %p1024_p5 = scmp.lt.u32.totalorder %s1635_s16, %s1683_s3 }
 0x1ff   : > { %p1025_p11 = scmp.lt.u32.totalorder %s1023_s22, %s1019_s23  ;;  %p1027_p4 = scmp.lt.u32.totalorder %s1019_s23, %s1635_s16 }
 0x200   : > { %p1021_p1 = pnand %p1020_p9, %p1207_p12 }
 0x201   : > { %p1026_p2 = por %p1025_p11, %p1024_p5 }
 0x202   : > { %p1022_p0 = pneg %p1021_p1 }
 0x203   : > { %p1028_p6 = por %p1027_p4, %p1026_p2 }
 0x205   : > { %p1029_p8 = pnand %p1028_p6, %p1022_p0 }
 0x207   : > { %1032 = shalt.err (!%p1029_p8)
}
 0x208   : > { %s1092_s20 = smov 256  }
 0x209   : > { %881 = dma.vmem_to_hbm [thread:$0]  (%p1207_p12), %s1630_s8, 1024, %s1635_s16, %s659_s25, %s1092_s20, %s1092_s20, %s1082_s18  }
 0x20a PF: > { %s687_s9 = sand.u32 1, %s1063_s12   ;;  %p1717_p10 = scmp.ne.s32.totalorder %s1689_s19, 0 }
 0x20b   : > { %p1718_p13 = scmp.ge.s32.totalorder %s1075_s15, 2  ;;  %s688_s7 = scalar_lea.sflag [#allocation4], %s687_s9 }
 0x20d   : > { %p892_p3 = pnand %p1718_p13, %p1717_p10 }
 0x20f   : > { %1058 = dma.done.wait (!%p892_p3), %s688_s7, 1024  }
 0x210   : > { %1060 = vsyncadd (!%p892_p3), %s688_s7, 4294966272  ;;  %p17_p7 = scmp.ge.s32.totalorder %s1169_s24, 4   ;;  %s1719_s12 = smov %s1067_s13 }
 0x211   : > { %s1720_s13 = smov %s1071_s14  ;;  %s1721_s14 = smov %s1203_s17 }
 0x212   : > { %s1722_s15 = smov %s1169_s24  ;;  %19 = sbr.rel (!%p17_p7) target bundleno = 6 (0x6), region = 84 }
 0x219   :  { %693 = vsyncpa [#allocation3], 1 }
 0x21a   :  { %695 = vsyncpa [#allocation3 + $0x1], 1 }
 0x21b   :  { %696 = vsyncpa [#allocation6], 1 }
 0x21c   :  { %697 = vsyncpa [#allocation4], 1 }
 0x21d   :  { %699 = vsyncpa [#allocation4 + $0x1], 1 }

</bundles_post_ra>
